<compile_context>
chip_gen: v6e
topology: v6e:2x2x1
jax: 0.10.0
libtpu: 0.0.40
codegen_flags: <defaults>
</compile_context>

<pallas_src>
import functools

import jax
import jax.numpy as jnp
from jax.experimental import pallas as pl
from jax.experimental.pallas import tpu as pltpu


def seq_decoder_kernel(hc_ref, whh_ref, wsum_ref, b0_ref, b_ref,
                       wlin_ref, blin_ref, out_ref, hs_s, *, future_preds):
    """Fused SeqDecoder forward: full recurrence + output projection in one call.

    Gate layout is [i, f, o, g] with each gate on its own 128-lane tile.
    """
    b_pad = hc_ref.shape[0] // 2          # padded batch (multiple of 8 sublanes)
    L = hc_ref.shape[1]                   # lane-padded hidden dim (multiple of 128)

    w_sum = wsum_ref[...]                                       # loop-invariant RHS
    bias = jnp.broadcast_to(b_ref[...], (b_pad, 4 * L))         # hoisted broadcasts
    bias0 = jnp.broadcast_to(b0_ref[...], (b_pad, 4 * L))

    def lstm_cell(h, c, w, b):
        # gates = h @ W + b   (x-term merged into W / folded into b in the wrapper)
        gates = jnp.dot(h, w, preferred_element_type=jnp.float32) + b
        # [i, f, o] share one sigmoid over 3L contiguous lanes; g is one tanh.
        sig = jax.nn.sigmoid(gates[:, :3 * L])
        g_g = jnp.tanh(gates[:, 3 * L:4 * L])
        i_g = sig[:, 0 * L:1 * L]                               # 128-lane aligned slices
        f_g = sig[:, 1 * L:2 * L]
        o_g = sig[:, 2 * L:3 * L]
        c_new = f_g * c + i_g * g_g
        h_new = o_g * jnp.tanh(c_new)
        return h_new, c_new

    # Step 0: start-token contribution is already folded into bias0.
    h0 = hc_ref[0:b_pad, :]
    c0 = hc_ref[b_pad:2 * b_pad, :]
    h, c = lstm_cell(h0, c0, whh_ref[...], bias0)
    hs_s[0:b_pad, :] = h                                        # full-vreg store

    # Steps 1..T-1: x_t = h_{t-1}  =>  single fused matmul with (W_ih + W_hh)^T.
    # Static unroll is fine at small T; switch to lax.fori_loop(unroll=4) if T grows.
    for t in range(1, future_preds):
        h, c = lstm_cell(h, c, w_sum, bias)
        hs_s[t * b_pad:(t + 1) * b_pad, :] = h                  # 8-sublane aligned

    # One lane-dense projection over all timesteps; single unmasked output store.
    out_ref[...] = (
        jnp.dot(hs_s[...], wlin_ref[...], preferred_element_type=jnp.float32)
        + blin_ref[...]
    ).astype(out_ref.dtype)


def prepare_decoder_params(params, *, zeros=True):
    """One-time padding / transposition / gate reordering (hoisted off hot path)."""
    D = params["w_hh"].shape[1]
    out_dim = params["w_lin"].shape[0]                          # 34
    L = ((D + 127) // 128) * 128                                # lane-padded hidden dim
    OUT_L = ((out_dim + 127) // 128) * 128                      # lane-padded output dim

    # PyTorch LSTMCell gate order along 4D is [i, f, g, o]; reorder to [i, f, o, g]
    # so sigmoid covers the first 3 gate tiles contiguously and tanh the last one.
    order = (0, 1, 3, 2)

    def pad_gate_w(w):
        # (4D, D) PyTorch layout -> (L, 4L): per-gate transpose, each gate block at a
        # 128-lane boundary, zero padding elsewhere (keeps the padded-lane invariant).
        blocks = []
        for k in order:
            blk = jnp.transpose(w[k * D:(k + 1) * D, :])        # (D, D)
            blocks.append(jnp.pad(blk, ((0, L - D), (0, L - D))))
        return jnp.concatenate(blocks, axis=1)

    def pad_gate_b(b):
        parts = [jnp.pad(b[k * D:(k + 1) * D], (0, L - D)) for k in order]
        return jnp.concatenate(parts).reshape(1, 4 * L)

    b_gates = params["b_ih"] + params["b_hh"]
    if zeros:
        b0 = b_gates                                            # x0 @ W_ih^T == 0
    else:
        b0 = b_gates + params["w_ih"].sum(axis=1)               # fold ones @ W_ih^T

    return {
        "D": D, "L": L, "out_dim": out_dim, "OUT_L": OUT_L,
        "w_hh_pad": pad_gate_w(params["w_hh"]),                 # step 0 RHS
        "w_sum_pad": pad_gate_w(params["w_ih"] + params["w_hh"]),  # steps >= 1 RHS
        "b0_pad": pad_gate_b(b0),
        "b_pad": pad_gate_b(b_gates),
        "w_lin_pad": jnp.pad(jnp.transpose(params["w_lin"]),
                             ((0, L - D), (0, OUT_L - out_dim))),   # (L, OUT_L)
        "b_lin_pad": jnp.pad(params["b_lin"], (0, OUT_L - out_dim)).reshape(1, OUT_L),
    }


def seq_decoder_forward(h, c, prep, *, future_preds=10):
    """Pallas equivalent of SeqDecoder.forward(h, c, future_preds)."""
    bsz, D = h.shape
    L, OUT_L, out_dim = prep["L"], prep["OUT_L"], prep["out_dim"]
    B_pad = ((bsz + 7) // 8) * 8                                # full 8-sublane tile

    # Stack h0 / c0 into one (2*B_pad, L) zero-padded block (single full-vreg DMA).
    hc = jnp.zeros((2 * B_pad, L), jnp.float32)
    hc = hc.at[0:bsz, 0:D].set(h.astype(jnp.float32))
    hc = hc.at[B_pad:B_pad + bsz, 0:D].set(c.astype(jnp.float32))

    kernel = functools.partial(seq_decoder_kernel, future_preds=future_preds)

    out = pl.pallas_call(
        kernel,
        out_shape=jax.ShapeDtypeStruct((future_preds * B_pad, OUT_L), jnp.float32),
        grid_spec=pltpu.PrefetchScalarGridSpec(
            num_scalar_prefetch=0,
            grid=(1,),
            in_specs=[
                pl.BlockSpec((2 * B_pad, L), lambda i: (0, 0)),      # stacked h0/c0
                pl.BlockSpec((L, 4 * L), lambda i: (0, 0)),          # W_hh^T padded (step 0)
                pl.BlockSpec((L, 4 * L), lambda i: (0, 0)),          # (W_ih+W_hh)^T padded
                pl.BlockSpec((1, 4 * L), lambda i: (0, 0)),          # bias for step 0
                pl.BlockSpec((1, 4 * L), lambda i: (0, 0)),          # bias for steps >= 1
                pl.BlockSpec((L, OUT_L), lambda i: (0, 0)),          # W_lin^T padded
                pl.BlockSpec((1, OUT_L), lambda i: (0, 0)),          # b_lin padded
            ],
            out_specs=pl.BlockSpec((future_preds * B_pad, OUT_L), lambda i: (0, 0)),
            scratch_shapes=[
                pltpu.VMEM((future_preds * B_pad, L), jnp.float32),  # stacked hidden states
            ],
        ),
        compiler_params=pltpu.CompilerParams(
            dimension_semantics=("arbitrary",)),
    )(hc, prep["w_hh_pad"], prep["w_sum_pad"], prep["b0_pad"], prep["b_pad"],
      prep["w_lin_pad"], prep["b_lin_pad"])

    # (T*B_pad, OUT_L) -> (B, T, 34); padded rows/lanes are discarded here.
    out = out.reshape(future_preds, B_pad, OUT_L)
    return jnp.transpose(out[:, :bsz, :out_dim], (1, 0, 2))


def seq_decoder_reference(h, c, params, *, future_preds=10, zeros=True):
    """Pure-JAX reference mirroring the PyTorch forward exactly."""
    bsz, D = h.shape
    x = jnp.zeros((bsz, D), jnp.float32) if zeros else jnp.ones((bsz, D), jnp.float32)
    h_t, c_t = h, c
    outs = []
    for _ in range(future_preds):
        gates = (x @ params["w_ih"].T + params["b_ih"]
                 + h_t @ params["w_hh"].T + params["b_hh"])
        i_g = jax.nn.sigmoid(gates[:, 0 * D:1 * D])
        f_g = jax.nn.sigmoid(gates[:, 1 * D:2 * D])
        g_g = jnp.tanh(gates[:, 2 * D:3 * D])
        o_g = jax.nn.sigmoid(gates[:, 3 * D:4 * D])
        c_t = f_g * c_t + i_g * g_g
        h_t = o_g * jnp.tanh(c_t)
        x = h_t
        outs.append(h_t[:, None, :])
    seq = jnp.concatenate(outs, axis=1)               # (B, T, D)
    return seq @ params["w_lin"].T + params["b_lin"]  # (B, T, 34)


def init_params(key, encoding_dim):
    """Deterministic init matching the shapes of SeqDecoder.__init__."""
    ks = jax.random.split(key, 8)
    D = encoding_dim
    bound = 1.0 / jnp.sqrt(D)
    u = lambda k, shape, b: jax.random.uniform(k, shape, jnp.float32, -b, b)
    # NOTE: lstm2 is declared in SeqDecoder.__init__ but never used in forward -> omitted.
    return {
        "w_ih": u(ks[0], (4 * D, D), bound),
        "w_hh": u(ks[1], (4 * D, D), bound),
        "b_ih": u(ks[2], (4 * D,), bound),
        "b_hh": u(ks[3], (4 * D,), bound),
        "w_lin": u(ks[4], (34, D), bound),
        "b_lin": u(ks[5], (34,), bound),
    }


if __name__ == "__main__":
    encoding_dim = 32
    bsz = 4
    future_preds = 8

    key = jax.random.PRNGKey(0)
    k_h, k_c, k_p = jax.random.split(key, 3)
    h = jax.random.normal(k_h, (bsz, encoding_dim), jnp.float32)
    c = jax.random.normal(k_c, (bsz, encoding_dim), jnp.float32)
    params = init_params(k_p, encoding_dim)

    # Padded/transposed/reordered weights built ONCE, outside the per-call path.
    prep = prepare_decoder_params(params, zeros=True)

    out = seq_decoder_forward(h, c, prep, future_preds=future_preds)
    out = jax.block_until_ready(out)
    assert out.shape == (bsz, future_preds, 34), out.shape

    ref = seq_decoder_reference(h, c, params, future_preds=future_preds, zeros=True)
    assert jnp.allclose(out, ref, atol=1e-5, rtol=1e-5), float(jnp.abs(out - ref).max())

    print("KERNEL_OK")
</pallas_src>

<mosaic_0001>
module attributes {stable_mosaic.version = 11 : i64} {
  func.func @seq_decoder_kernel(%arg0: i32, %arg1: memref<16x128xf32, #tpu.memory_space<vmem>>, %arg2: memref<128x512xf32, #tpu.memory_space<vmem>>, %arg3: memref<128x512xf32, #tpu.memory_space<vmem>>, %arg4: memref<1x512xf32, #tpu.memory_space<vmem>>, %arg5: memref<1x512xf32, #tpu.memory_space<vmem>>, %arg6: memref<128x128xf32, #tpu.memory_space<vmem>>, %arg7: memref<1x128xf32, #tpu.memory_space<vmem>>, %arg8: memref<64x128xf32, #tpu.memory_space<vmem>>, %arg9: memref<64x128xf32, #tpu.memory_space<vmem>>) attributes {dimension_semantics = [#tpu.dimension_semantics<arbitrary>], iteration_bounds = array<i64: 1>, scalar_prefetch = 0 : i64, scratch_operands = 1 : i64, tpu.core_type = #tpu.core_type<tc>, window_params = [{pipeline_mode = #tpu.pipeline_mode<synchronous>, transform_indices = @transform_0, window_bounds = array<i64: 16, 128>}, {pipeline_mode = #tpu.pipeline_mode<synchronous>, transform_indices = @transform_1, window_bounds = array<i64: 128, 512>}, {pipeline_mode = #tpu.pipeline_mode<synchronous>, transform_indices = @transform_2, window_bounds = array<i64: 128, 512>}, {pipeline_mode = #tpu.pipeline_mode<synchronous>, transform_indices = @transform_3, window_bounds = array<i64: 1, 512>}, {pipeline_mode = #tpu.pipeline_mode<synchronous>, transform_indices = @transform_4, window_bounds = array<i64: 1, 512>}, {pipeline_mode = #tpu.pipeline_mode<synchronous>, transform_indices = @transform_5, window_bounds = array<i64: 128, 128>}, {pipeline_mode = #tpu.pipeline_mode<synchronous>, transform_indices = @transform_6, window_bounds = array<i64: 1, 128>}, {pipeline_mode = #tpu.pipeline_mode<synchronous>, transform_indices = @transform_7, window_bounds = array<i64: 64, 128>}]} {
    %c0 = arith.constant 0 : index
    %c0_0 = arith.constant 0 : index
    %0 = vector.load %arg3[%c0, %c0_0] : memref<128x512xf32, #tpu.memory_space<vmem>>, vector<128x512xf32>
    %c0_1 = arith.constant 0 : index
    %c0_2 = arith.constant 0 : index
    %1 = vector.load %arg5[%c0_1, %c0_2] : memref<1x512xf32, #tpu.memory_space<vmem>>, vector<1x512xf32>
    %2 = vector.shape_cast %1 : vector<1x512xf32> to vector<1x512xf32>
    %3 = vector.broadcast %2 : vector<1x512xf32> to vector<8x512xf32>
    %c0_3 = arith.constant 0 : index
    %c0_4 = arith.constant 0 : index
    %4 = vector.load %arg4[%c0_3, %c0_4] : memref<1x512xf32, #tpu.memory_space<vmem>>, vector<1x512xf32>
    %5 = vector.shape_cast %4 : vector<1x512xf32> to vector<1x512xf32>
    %6 = vector.broadcast %5 : vector<1x512xf32> to vector<8x512xf32>
    %c0_5 = arith.constant 0 : index
    %c0_6 = arith.constant 0 : index
    %7 = vector.load %arg1[%c0_5, %c0_6] : memref<16x128xf32, #tpu.memory_space<vmem>>, vector<8x128xf32>
    %c8 = arith.constant 8 : index
    %c0_7 = arith.constant 0 : index
    %8 = vector.load %arg1[%c8, %c0_7] : memref<16x128xf32, #tpu.memory_space<vmem>>, vector<8x128xf32>
    %c0_8 = arith.constant 0 : index
    %c0_9 = arith.constant 0 : index
    %9 = vector.load %arg2[%c0_8, %c0_9] : memref<128x512xf32, #tpu.memory_space<vmem>>, vector<128x512xf32>
    %cst = arith.constant dense<0.000000e+00> : vector<8x512xf32>
    %10 = tpu.matmul %7, %9, %cst {dimension_numbers = #tpu.dot_dimension_numbers<[1], [0], [0], [1], [0, 0, 1, 1], [], []>} : vector<8x128xf32>, vector<128x512xf32>, vector<8x512xf32> -> vector<8x512xf32>
    %11 = arith.addf %10, %6 : vector<8x512xf32>
    %12 = vector.extract_strided_slice %11 {offsets = [0, 0], sizes = [8, 384], strides = [1, 1]} : vector<8x512xf32> to vector<8x384xf32>
    %13 = arith.negf %12 : vector<8x384xf32>
    %14 = math.exp %13 : vector<8x384xf32>
    %cst_10 = arith.constant 1.000000e+00 : f32
    %15 = vector.broadcast %cst_10 : f32 to vector<8x384xf32>
    %16 = arith.addf %15, %14 : vector<8x384xf32>
    %17 = arith.divf %15, %16 : vector<8x384xf32>
    %18 = vector.extract_strided_slice %11 {offsets = [0, 384], sizes = [8, 128], strides = [1, 1]} : vector<8x512xf32> to vector<8x128xf32>
    %19 = math.tanh %18 : vector<8x128xf32>
    %20 = vector.extract_strided_slice %17 {offsets = [0, 0], sizes = [8, 128], strides = [1, 1]} : vector<8x384xf32> to vector<8x128xf32>
    %21 = vector.extract_strided_slice %17 {offsets = [0, 128], sizes = [8, 128], strides = [1, 1]} : vector<8x384xf32> to vector<8x128xf32>
    %22 = vector.extract_strided_slice %17 {offsets = [0, 256], sizes = [8, 128], strides = [1, 1]} : vector<8x384xf32> to vector<8x128xf32>
    %23 = arith.mulf %21, %8 : vector<8x128xf32>
    %24 = arith.mulf %20, %19 : vector<8x128xf32>
    %25 = arith.addf %23, %24 : vector<8x128xf32>
    %26 = math.tanh %25 : vector<8x128xf32>
    %27 = arith.mulf %22, %26 : vector<8x128xf32>
    %c0_11 = arith.constant 0 : index
    %c0_12 = arith.constant 0 : index
    %28 = vector.load %arg9[%c0_11, %c0_12] : memref<64x128xf32, #tpu.memory_space<vmem>>, vector<8x128xf32>
    tpu.vector_store %arg9[%c0_11, %c0_12], %27 {strides = array<i32>} : memref<64x128xf32, #tpu.memory_space<vmem>>, vector<8x128xf32>,
    %cst_13 = arith.constant dense<0.000000e+00> : vector<8x512xf32>
    %29 = tpu.matmul %27, %0, %cst_13 {dimension_numbers = #tpu.dot_dimension_numbers<[1], [0], [0], [1], [0, 0, 1, 1], [], []>} : vector<8x128xf32>, vector<128x512xf32>, vector<8x512xf32> -> vector<8x512xf32>
    %30 = arith.addf %29, %3 : vector<8x512xf32>
    %31 = vector.extract_strided_slice %30 {offsets = [0, 0], sizes = [8, 384], strides = [1, 1]} : vector<8x512xf32> to vector<8x384xf32>
    %32 = arith.negf %31 : vector<8x384xf32>
    %33 = math.exp %32 : vector<8x384xf32>
    %cst_14 = arith.constant 1.000000e+00 : f32
    %34 = vector.broadcast %cst_14 : f32 to vector<8x384xf32>
    %35 = arith.addf %34, %33 : vector<8x384xf32>
    %36 = arith.divf %34, %35 : vector<8x384xf32>
    %37 = vector.extract_strided_slice %30 {offsets = [0, 384], sizes = [8, 128], strides = [1, 1]} : vector<8x512xf32> to vector<8x128xf32>
    %38 = math.tanh %37 : vector<8x128xf32>
    %39 = vector.extract_strided_slice %36 {offsets = [0, 0], sizes = [8, 128], strides = [1, 1]} : vector<8x384xf32> to vector<8x128xf32>
    %40 = vector.extract_strided_slice %36 {offsets = [0, 128], sizes = [8, 128], strides = [1, 1]} : vector<8x384xf32> to vector<8x128xf32>
    %41 = vector.extract_strided_slice %36 {offsets = [0, 256], sizes = [8, 128], strides = [1, 1]} : vector<8x384xf32> to vector<8x128xf32>
    %42 = arith.mulf %40, %25 : vector<8x128xf32>
    %43 = arith.mulf %39, %38 : vector<8x128xf32>
    %44 = arith.addf %42, %43 : vector<8x128xf32>
    %45 = math.tanh %44 : vector<8x128xf32>
    %46 = arith.mulf %41, %45 : vector<8x128xf32>
    %c8_15 = arith.constant 8 : index
    %c0_16 = arith.constant 0 : index
    %47 = vector.load %arg9[%c8_15, %c0_16] : memref<64x128xf32, #tpu.memory_space<vmem>>, vector<8x128xf32>
    tpu.vector_store %arg9[%c8_15, %c0_16], %46 {strides = array<i32>} : memref<64x128xf32, #tpu.memory_space<vmem>>, vector<8x128xf32>,
    %cst_17 = arith.constant dense<0.000000e+00> : vector<8x512xf32>
    %48 = tpu.matmul %46, %0, %cst_17 {dimension_numbers = #tpu.dot_dimension_numbers<[1], [0], [0], [1], [0, 0, 1, 1], [], []>} : vector<8x128xf32>, vector<128x512xf32>, vector<8x512xf32> -> vector<8x512xf32>
    %49 = arith.addf %48, %3 : vector<8x512xf32>
    %50 = vector.extract_strided_slice %49 {offsets = [0, 0], sizes = [8, 384], strides = [1, 1]} : vector<8x512xf32> to vector<8x384xf32>
    %51 = arith.negf %50 : vector<8x384xf32>
    %52 = math.exp %51 : vector<8x384xf32>
    %cst_18 = arith.constant 1.000000e+00 : f32
    %53 = vector.broadcast %cst_18 : f32 to vector<8x384xf32>
    %54 = arith.addf %53, %52 : vector<8x384xf32>
    %55 = arith.divf %53, %54 : vector<8x384xf32>
    %56 = vector.extract_strided_slice %49 {offsets = [0, 384], sizes = [8, 128], strides = [1, 1]} : vector<8x512xf32> to vector<8x128xf32>
    %57 = math.tanh %56 : vector<8x128xf32>
    %58 = vector.extract_strided_slice %55 {offsets = [0, 0], sizes = [8, 128], strides = [1, 1]} : vector<8x384xf32> to vector<8x128xf32>
    %59 = vector.extract_strided_slice %55 {offsets = [0, 128], sizes = [8, 128], strides = [1, 1]} : vector<8x384xf32> to vector<8x128xf32>
    %60 = vector.extract_strided_slice %55 {offsets = [0, 256], sizes = [8, 128], strides = [1, 1]} : vector<8x384xf32> to vector<8x128xf32>
    %61 = arith.mulf %59, %44 : vector<8x128xf32>
    %62 = arith.mulf %58, %57 : vector<8x128xf32>
    %63 = arith.addf %61, %62 : vector<8x128xf32>
    %64 = math.tanh %63 : vector<8x128xf32>
    %65 = arith.mulf %60, %64 : vector<8x128xf32>
    %c16 = arith.constant 16 : index
    %c0_19 = arith.constant 0 : index
    %66 = vector.load %arg9[%c16, %c0_19] : memref<64x128xf32, #tpu.memory_space<vmem>>, vector<8x128xf32>
    tpu.vector_store %arg9[%c16, %c0_19], %65 {strides = array<i32>} : memref<64x128xf32, #tpu.memory_space<vmem>>, vector<8x128xf32>,
    %cst_20 = arith.constant dense<0.000000e+00> : vector<8x512xf32>
    %67 = tpu.matmul %65, %0, %cst_20 {dimension_numbers = #tpu.dot_dimension_numbers<[1], [0], [0], [1], [0, 0, 1, 1], [], []>} : vector<8x128xf32>, vector<128x512xf32>, vector<8x512xf32> -> vector<8x512xf32>
    %68 = arith.addf %67, %3 : vector<8x512xf32>
    %69 = vector.extract_strided_slice %68 {offsets = [0, 0], sizes = [8, 384], strides = [1, 1]} : vector<8x512xf32> to vector<8x384xf32>
    %70 = arith.negf %69 : vector<8x384xf32>
    %71 = math.exp %70 : vector<8x384xf32>
    %cst_21 = arith.constant 1.000000e+00 : f32
    %72 = vector.broadcast %cst_21 : f32 to vector<8x384xf32>
    %73 = arith.addf %72, %71 : vector<8x384xf32>
    %74 = arith.divf %72, %73 : vector<8x384xf32>
    %75 = vector.extract_strided_slice %68 {offsets = [0, 384], sizes = [8, 128], strides = [1, 1]} : vector<8x512xf32> to vector<8x128xf32>
    %76 = math.tanh %75 : vector<8x128xf32>
    %77 = vector.extract_strided_slice %74 {offsets = [0, 0], sizes = [8, 128], strides = [1, 1]} : vector<8x384xf32> to vector<8x128xf32>
    %78 = vector.extract_strided_slice %74 {offsets = [0, 128], sizes = [8, 128], strides = [1, 1]} : vector<8x384xf32> to vector<8x128xf32>
    %79 = vector.extract_strided_slice %74 {offsets = [0, 256], sizes = [8, 128], strides = [1, 1]} : vector<8x384xf32> to vector<8x128xf32>
    %80 = arith.mulf %78, %63 : vector<8x128xf32>
    %81 = arith.mulf %77, %76 : vector<8x128xf32>
    %82 = arith.addf %80, %81 : vector<8x128xf32>
    %83 = math.tanh %82 : vector<8x128xf32>
    %84 = arith.mulf %79, %83 : vector<8x128xf32>
    %c24 = arith.constant 24 : index
    %c0_22 = arith.constant 0 : index
    %85 = vector.load %arg9[%c24, %c0_22] : memref<64x128xf32, #tpu.memory_space<vmem>>, vector<8x128xf32>
    tpu.vector_store %arg9[%c24, %c0_22], %84 {strides = array<i32>} : memref<64x128xf32, #tpu.memory_space<vmem>>, vector<8x128xf32>,
    %cst_23 = arith.constant dense<0.000000e+00> : vector<8x512xf32>
    %86 = tpu.matmul %84, %0, %cst_23 {dimension_numbers = #tpu.dot_dimension_numbers<[1], [0], [0], [1], [0, 0, 1, 1], [], []>} : vector<8x128xf32>, vector<128x512xf32>, vector<8x512xf32> -> vector<8x512xf32>
    %87 = arith.addf %86, %3 : vector<8x512xf32>
    %88 = vector.extract_strided_slice %87 {offsets = [0, 0], sizes = [8, 384], strides = [1, 1]} : vector<8x512xf32> to vector<8x384xf32>
    %89 = arith.negf %88 : vector<8x384xf32>
    %90 = math.exp %89 : vector<8x384xf32>
    %cst_24 = arith.constant 1.000000e+00 : f32
    %91 = vector.broadcast %cst_24 : f32 to vector<8x384xf32>
    %92 = arith.addf %91, %90 : vector<8x384xf32>
    %93 = arith.divf %91, %92 : vector<8x384xf32>
    %94 = vector.extract_strided_slice %87 {offsets = [0, 384], sizes = [8, 128], strides = [1, 1]} : vector<8x512xf32> to vector<8x128xf32>
    %95 = math.tanh %94 : vector<8x128xf32>
    %96 = vector.extract_strided_slice %93 {offsets = [0, 0], sizes = [8, 128], strides = [1, 1]} : vector<8x384xf32> to vector<8x128xf32>
    %97 = vector.extract_strided_slice %93 {offsets = [0, 128], sizes = [8, 128], strides = [1, 1]} : vector<8x384xf32> to vector<8x128xf32>
    %98 = vector.extract_strided_slice %93 {offsets = [0, 256], sizes = [8, 128], strides = [1, 1]} : vector<8x384xf32> to vector<8x128xf32>
    %99 = arith.mulf %97, %82 : vector<8x128xf32>
    %100 = arith.mulf %96, %95 : vector<8x128xf32>
    %101 = arith.addf %99, %100 : vector<8x128xf32>
    %102 = math.tanh %101 : vector<8x128xf32>
    %103 = arith.mulf %98, %102 : vector<8x128xf32>
    %c32 = arith.constant 32 : index
    %c0_25 = arith.constant 0 : index
    %104 = vector.load %arg9[%c32, %c0_25] : memref<64x128xf32, #tpu.memory_space<vmem>>, vector<8x128xf32>
    tpu.vector_store %arg9[%c32, %c0_25], %103 {strides = array<i32>} : memref<64x128xf32, #tpu.memory_space<vmem>>, vector<8x128xf32>,
    %cst_26 = arith.constant dense<0.000000e+00> : vector<8x512xf32>
    %105 = tpu.matmul %103, %0, %cst_26 {dimension_numbers = #tpu.dot_dimension_numbers<[1], [0], [0], [1], [0, 0, 1, 1], [], []>} : vector<8x128xf32>, vector<128x512xf32>, vector<8x512xf32> -> vector<8x512xf32>
    %106 = arith.addf %105, %3 : vector<8x512xf32>
    %107 = vector.extract_strided_slice %106 {offsets = [0, 0], sizes = [8, 384], strides = [1, 1]} : vector<8x512xf32> to vector<8x384xf32>
    %108 = arith.negf %107 : vector<8x384xf32>
    %109 = math.exp %108 : vector<8x384xf32>
    %cst_27 = arith.constant 1.000000e+00 : f32
    %110 = vector.broadcast %cst_27 : f32 to vector<8x384xf32>
    %111 = arith.addf %110, %109 : vector<8x384xf32>
    %112 = arith.divf %110, %111 : vector<8x384xf32>
    %113 = vector.extract_strided_slice %106 {offsets = [0, 384], sizes = [8, 128], strides = [1, 1]} : vector<8x512xf32> to vector<8x128xf32>
    %114 = math.tanh %113 : vector<8x128xf32>
    %115 = vector.extract_strided_slice %112 {offsets = [0, 0], sizes = [8, 128], strides = [1, 1]} : vector<8x384xf32> to vector<8x128xf32>
    %116 = vector.extract_strided_slice %112 {offsets = [0, 128], sizes = [8, 128], strides = [1, 1]} : vector<8x384xf32> to vector<8x128xf32>
    %117 = vector.extract_strided_slice %112 {offsets = [0, 256], sizes = [8, 128], strides = [1, 1]} : vector<8x384xf32> to vector<8x128xf32>
    %118 = arith.mulf %116, %101 : vector<8x128xf32>
    %119 = arith.mulf %115, %114 : vector<8x128xf32>
    %120 = arith.addf %118, %119 : vector<8x128xf32>
    %121 = math.tanh %120 : vector<8x128xf32>
    %122 = arith.mulf %117, %121 : vector<8x128xf32>
    %c40 = arith.constant 40 : index
    %c0_28 = arith.constant 0 : index
    %123 = vector.load %arg9[%c40, %c0_28] : memref<64x128xf32, #tpu.memory_space<vmem>>, vector<8x128xf32>
    tpu.vector_store %arg9[%c40, %c0_28], %122 {strides = array<i32>} : memref<64x128xf32, #tpu.memory_space<vmem>>, vector<8x128xf32>,
    %cst_29 = arith.constant dense<0.000000e+00> : vector<8x512xf32>
    %124 = tpu.matmul %122, %0, %cst_29 {dimension_numbers = #tpu.dot_dimension_numbers<[1], [0], [0], [1], [0, 0, 1, 1], [], []>} : vector<8x128xf32>, vector<128x512xf32>, vector<8x512xf32> -> vector<8x512xf32>
    %125 = arith.addf %124, %3 : vector<8x512xf32>
    %126 = vector.extract_strided_slice %125 {offsets = [0, 0], sizes = [8, 384], strides = [1, 1]} : vector<8x512xf32> to vector<8x384xf32>
    %127 = arith.negf %126 : vector<8x384xf32>
    %128 = math.exp %127 : vector<8x384xf32>
    %cst_30 = arith.constant 1.000000e+00 : f32
    %129 = vector.broadcast %cst_30 : f32 to vector<8x384xf32>
    %130 = arith.addf %129, %128 : vector<8x384xf32>
    %131 = arith.divf %129, %130 : vector<8x384xf32>
    %132 = vector.extract_strided_slice %125 {offsets = [0, 384], sizes = [8, 128], strides = [1, 1]} : vector<8x512xf32> to vector<8x128xf32>
    %133 = math.tanh %132 : vector<8x128xf32>
    %134 = vector.extract_strided_slice %131 {offsets = [0, 0], sizes = [8, 128], strides = [1, 1]} : vector<8x384xf32> to vector<8x128xf32>
    %135 = vector.extract_strided_slice %131 {offsets = [0, 128], sizes = [8, 128], strides = [1, 1]} : vector<8x384xf32> to vector<8x128xf32>
    %136 = vector.extract_strided_slice %131 {offsets = [0, 256], sizes = [8, 128], strides = [1, 1]} : vector<8x384xf32> to vector<8x128xf32>
    %137 = arith.mulf %135, %120 : vector<8x128xf32>
    %138 = arith.mulf %134, %133 : vector<8x128xf32>
    %139 = arith.addf %137, %138 : vector<8x128xf32>
    %140 = math.tanh %139 : vector<8x128xf32>
    %141 = arith.mulf %136, %140 : vector<8x128xf32>
    %c48 = arith.constant 48 : index
    %c0_31 = arith.constant 0 : index
    %142 = vector.load %arg9[%c48, %c0_31] : memref<64x128xf32, #tpu.memory_space<vmem>>, vector<8x128xf32>
    tpu.vector_store %arg9[%c48, %c0_31], %141 {strides = array<i32>} : memref<64x128xf32, #tpu.memory_space<vmem>>, vector<8x128xf32>,
    %cst_32 = arith.constant dense<0.000000e+00> : vector<8x512xf32>
    %143 = tpu.matmul %141, %0, %cst_32 {dimension_numbers = #tpu.dot_dimension_numbers<[1], [0], [0], [1], [0, 0, 1, 1], [], []>} : vector<8x128xf32>, vector<128x512xf32>, vector<8x512xf32> -> vector<8x512xf32>
    %144 = arith.addf %143, %3 : vector<8x512xf32>
    %145 = vector.extract_strided_slice %144 {offsets = [0, 0], sizes = [8, 384], strides = [1, 1]} : vector<8x512xf32> to vector<8x384xf32>
    %146 = arith.negf %145 : vector<8x384xf32>
    %147 = math.exp %146 : vector<8x384xf32>
    %cst_33 = arith.constant 1.000000e+00 : f32
    %148 = vector.broadcast %cst_33 : f32 to vector<8x384xf32>
    %149 = arith.addf %148, %147 : vector<8x384xf32>
    %150 = arith.divf %148, %149 : vector<8x384xf32>
    %151 = vector.extract_strided_slice %144 {offsets = [0, 384], sizes = [8, 128], strides = [1, 1]} : vector<8x512xf32> to vector<8x128xf32>
    %152 = math.tanh %151 : vector<8x128xf32>
    %153 = vector.extract_strided_slice %150 {offsets = [0, 0], sizes = [8, 128], strides = [1, 1]} : vector<8x384xf32> to vector<8x128xf32>
    %154 = vector.extract_strided_slice %150 {offsets = [0, 128], sizes = [8, 128], strides = [1, 1]} : vector<8x384xf32> to vector<8x128xf32>
    %155 = vector.extract_strided_slice %150 {offsets = [0, 256], sizes = [8, 128], strides = [1, 1]} : vector<8x384xf32> to vector<8x128xf32>
    %156 = arith.mulf %154, %139 : vector<8x128xf32>
    %157 = arith.mulf %153, %152 : vector<8x128xf32>
    %158 = arith.addf %156, %157 : vector<8x128xf32>
    %159 = math.tanh %158 : vector<8x128xf32>
    %160 = arith.mulf %155, %159 : vector<8x128xf32>
    %c56 = arith.constant 56 : index
    %c0_34 = arith.constant 0 : index
    %161 = vector.load %arg9[%c56, %c0_34] : memref<64x128xf32, #tpu.memory_space<vmem>>, vector<8x128xf32>
    tpu.vector_store %arg9[%c56, %c0_34], %160 {strides = array<i32>} : memref<64x128xf32, #tpu.memory_space<vmem>>, vector<8x128xf32>,
    %c0_35 = arith.constant 0 : index
    %c0_36 = arith.constant 0 : index
    %162 = vector.load %arg9[%c0_35, %c0_36] : memref<64x128xf32, #tpu.memory_space<vmem>>, vector<64x128xf32>
    %c0_37 = arith.constant 0 : index
    %c0_38 = arith.constant 0 : index
    %163 = vector.load %arg6[%c0_37, %c0_38] : memref<128x128xf32, #tpu.memory_space<vmem>>, vector<128x128xf32>
    %cst_39 = arith.constant dense<0.000000e+00> : vector<64x128xf32>
    %164 = tpu.matmul %162, %163, %cst_39 {dimension_numbers = #tpu.dot_dimension_numbers<[1], [0], [0], [1], [0, 0, 1, 1], [], []>} : vector<64x128xf32>, vector<128x128xf32>, vector<64x128xf32> -> vector<64x128xf32>
    %c0_40 = arith.constant 0 : index
    %c0_41 = arith.constant 0 : index
    %165 = vector.load %arg7[%c0_40, %c0_41] : memref<1x128xf32, #tpu.memory_space<vmem>>, vector<1x128xf32>
    %166 = vector.broadcast %165 : vector<1x128xf32> to vector<64x128xf32>
    %167 = arith.addf %164, %166 : vector<64x128xf32>
    %c0_42 = arith.constant 0 : index
    %c0_43 = arith.constant 0 : index
    %168 = vector.load %arg8[%c0_42, %c0_43] : memref<64x128xf32, #tpu.memory_space<vmem>>, vector<64x128xf32>
    tpu.vector_store %arg8[%c0_42, %c0_43], %167 {strides = array<i32>} : memref<64x128xf32, #tpu.memory_space<vmem>>, vector<64x128xf32>,
    return
  }
  func.func @transform_0(%arg0: i32) -> (i32, i32) {
    %c0_i32 = arith.constant 0 : i32
    %c0_i32_0 = arith.constant 0 : i32
    %c0_i32_1 = arith.constant 0 : i32
    return %c0_i32, %c0_i32_0 : i32, i32
  }
  func.func @transform_1(%arg0: i32) -> (i32, i32) {
    %c0_i32 = arith.constant 0 : i32
    %c0_i32_0 = arith.constant 0 : i32
    %c0_i32_1 = arith.constant 0 : i32
    return %c0_i32, %c0_i32_0 : i32, i32
  }
  func.func @transform_2(%arg0: i32) -> (i32, i32) {
    %c0_i32 = arith.constant 0 : i32
    %c0_i32_0 = arith.constant 0 : i32
    %c0_i32_1 = arith.constant 0 : i32
    return %c0_i32, %c0_i32_0 : i32, i32
  }
  func.func @transform_3(%arg0: i32) -> (i32, i32) {
    %c0_i32 = arith.constant 0 : i32
    %c0_i32_0 = arith.constant 0 : i32
    %c0_i32_1 = arith.constant 0 : i32
    return %c0_i32, %c0_i32_0 : i32, i32
  }
  func.func @transform_4(%arg0: i32) -> (i32, i32) {
    %c0_i32 = arith.constant 0 : i32
    %c0_i32_0 = arith.constant 0 : i32
    %c0_i32_1 = arith.constant 0 : i32
    return %c0_i32, %c0_i32_0 : i32, i32
  }
  func.func @transform_5(%arg0: i32) -> (i32, i32) {
    %c0_i32 = arith.constant 0 : i32
    %c0_i32_0 = arith.constant 0 : i32
    %c0_i32_1 = arith.constant 0 : i32
    return %c0_i32, %c0_i32_0 : i32, i32
  }
  func.func @transform_6(%arg0: i32) -> (i32, i32) {
    %c0_i32 = arith.constant 0 : i32
    %c0_i32_0 = arith.constant 0 : i32
    %c0_i32_1 = arith.constant 0 : i32
    return %c0_i32, %c0_i32_0 : i32, i32
  }
  func.func @transform_7(%arg0: i32) -> (i32, i32) {
    %c0_i32 = arith.constant 0 : i32
    %c0_i32_0 = arith.constant 0 : i32
    %c0_i32_1 = arith.constant 0 : i32
    return %c0_i32, %c0_i32_0 : i32, i32
  }
}

</mosaic_0001>

<bundles_post_ra>
// kernel: tpu_custom_call.1
= control target key start
LH: loop header
LB: loop body
LE: loop exit
PB: predicated region body
PF: predicated region fallthrough
CT: control target
= control target key end

     0   :  { %12 = vsyncpa [#allocation4], 0  ;;  %s3120_s0 = inlined_call_operand.hbm [shape: f32[16,128], index: 0, kind: input, shape index: {}]   ;;  %s3121_s1 = inlined_call_operand.hbm [shape: f32[128,512], index: 1, kind: input, shape index: {}]   ;;  %s3122_s2 = inlined_call_operand.hbm [shape: f32[128,512], index: 2, kind: input, shape index: {}]   ;;  %s3123_s3 = inlined_call_operand.vmem [shape: f32[1,512], index: 3, kind: input, shape index: {}]   ;;  %s3124_s4 = inlined_call_operand.hbm [shape: f32[1,512], index: 4, kind: input, shape index: {}]   ;;  %s3125_s5 = inlined_call_operand.hbm [shape: f32[128,128], index: 5, kind: input, shape index: {}]   ;;  %s3126_s6 = inlined_call_operand.vmem [shape: f32[1,128], index: 6, kind: input, shape index: {}]   ;;  %s3127_s7 = inlined_call_operand.hbm [shape: f32[64,128], index: 7, kind: output, shape index: {}]  }
   0x1   :  { %13 = vsyncpa [#allocation7], 0 }
   0x2   :  { %14 = vsyncpa [#allocation10], 0 }
   0x3   :  { %15 = vsyncpa [#allocation5], 0  ;;  %s2190_s24 = smov [#allocation6]  }
   0x4   :  { %s33_s25 = sshll.u32 %s2190_s24, 4  ;;  %s34_s25 = int_to_ptr.vmem [resolvable:$true] %s33_s25 }
   0x5   :  { %s2070_s26 = scalar_lea.vmem %s34_s25, 8192  ;;  %p2075_p1 = scmp.lt.s32.totalorder %s34_s25, %s34_s25 }
   0x6   :  { %p2071_p0 = scmp.ne.s32.totalorder %s34_s25, %s2070_s26  ;;  %p2076_p2 = scmp.lt.s32.totalorder %s2070_s26, %s2070_s26 }
   0x8   :  { %p2077_p3 = por %p2076_p2, %p2075_p1 }
   0xa   :  { %p2078_p4 = pnand %p2077_p3, %p2071_p0 }
   0xc   :  { %2081 = shalt.err (!%p2078_p4)
}
   0xd   :  { %s2191_s27 = smov 512   ;;  %s2192_s28 = smov 32  }
   0xe   :  { %39 = dma.hbm_to_vmem [thread:$0]  %s3121_s1, 8192, %s34_s25, [#allocation7], %s2191_s27, %s2191_s27, %s2192_s28  }
   0xf   :  { %s2193_s8 = smov [#allocation9]   ;;  %s2194_s10 = smov [#allocation3]  }
  0x10   :  { %s60_s9 = sshll.u32 %s2193_s8, 4  ;;  %s21_s11 = sshll.u32 %s2194_s10, 4  ;;  %s61_s9 = int_to_ptr.vmem [resolvable:$true] %s60_s9  ;;  %s22_s11 = int_to_ptr.vmem [resolvable:$true] %s21_s11 }
  0x11   :  { %s2090_s12 = scalar_lea.vmem %s61_s9, 64  ;;  %p2095_p6 = scmp.lt.s32.totalorder %s61_s9, %s61_s9 }
  0x12   :  { %p2091_p5 = scmp.ne.s32.totalorder %s61_s9, %s2090_s12  ;;  %p2096_p7 = scmp.lt.s32.totalorder %s2090_s12, %s2090_s12 }
  0x14   :  { %p2097_p8 = por %p2096_p7, %p2095_p6 }
  0x16   :  { %p2098_p9 = pnand %p2097_p8, %p2091_p5 }
  0x18   :  { %2101 = shalt.err (!%p2098_p9)
}
  0x19   :  { %63 = dma.hbm_to_vmem [thread:$0]  %s3124_s4, 64, %s61_s9, [#allocation10]  }
  0x1a   :  { %s2110_s15 = scalar_lea.vmem %s22_s11, 256  ;;  %p2115_p11 = scmp.lt.s32.totalorder %s22_s11, %s22_s11 }
  0x1b   :  { %p2111_p10 = scmp.ne.s32.totalorder %s22_s11, %s2110_s15  ;;  %p2116_p12 = scmp.lt.s32.totalorder %s2110_s15, %s2110_s15 }
  0x1d   :  { %p2117_p13 = por %p2116_p12, %p2115_p11 }
  0x1f   :  { %p2118_p0 = pnand %p2117_p13, %p2111_p10 }
  0x21   :  { %2121 = shalt.err (!%p2118_p0)
}
  0x22   :  { %s2195_s1 = smov 128   ;;  %s2196_s16 = smov 8  }
  0x23   :  { %27 = dma.hbm_to_vmem [thread:$0]  %s3120_s0, 256, %s22_s11, [#allocation4], %s2195_s1, %s2195_s1, %s2196_s16  }
  0x24   :  { %s2197_s19 = smov [#allocation8]   ;;  %s2198_s4 = smov [#allocation11]  }
  0x25   :  { %s45_s20 = sshll.u32 %s2197_s19, 4  ;;  %s69_s21 = sshll.u32 %s2198_s4, 4  ;;  %s46_s20 = int_to_ptr.vmem [resolvable:$true] %s45_s20  ;;  %s70_s21 = int_to_ptr.vmem [resolvable:$true] %s69_s21 }
  0x26   :  { %s2130_s22 = scalar_lea.vmem %s46_s20, 8192  ;;  %p2135_p2 = scmp.lt.s32.totalorder %s46_s20, %s46_s20 }
  0x27   :  { %p2131_p1 = scmp.ne.s32.totalorder %s46_s20, %s2130_s22  ;;  %p2136_p3 = scmp.lt.s32.totalorder %s2130_s22, %s2130_s22 }
  0x29   :  { %p2137_p4 = por %p2136_p3, %p2135_p2 }
  0x2b   :  { %p2138_p5 = pnand %p2137_p4, %p2131_p1 }
  0x2d   :  { %2141 = shalt.err (!%p2138_p5)
}
  0x2e   :  { %51 = dma.hbm_to_vmem [thread:$0]  %s3122_s2, 8192, %s46_s20, [#allocation7], %s2191_s27, %s2191_s27, %s2192_s28  }
  0x2f   :  { %s2150_s0 = scalar_lea.vmem %s70_s21, 2048  ;;  %p2155_p7 = scmp.lt.s32.totalorder %s70_s21, %s70_s21 }
  0x30   :  { %p2151_p6 = scmp.ne.s32.totalorder %s70_s21, %s2150_s0  ;;  %p2156_p8 = scmp.lt.s32.totalorder %s2150_s0, %s2150_s0 }
  0x32   :  { %p2157_p9 = por %p2156_p8, %p2155_p7 }
  0x34   :  { %p2158_p10 = pnand %p2157_p9, %p2151_p6 }
  0x36   :  { %2161 = shalt.err (!%p2158_p10)
}
  0x37   :  { %75 = dma.hbm_to_vmem [thread:$0]  %s3125_s5, 2048, %s70_s21, [#allocation10], %s2195_s1, %s2195_s1, %s2196_s16  }
  0x38   :  { %2182 = dma.done.wait [#allocation4], 256  }
  0x39   :  { %2183 = vsyncadd [#allocation4], 4294967040 }
  0x3a   :  { %2184 = dma.done.wait [#allocation7], 16384  }
  0x3b   :  { %2185 = vsyncadd [#allocation7], 4294950912 }
  0x3c   :  { %2186 = dma.done.wait [#allocation10], 2112  }
  0x3d   :  { %2187 = vsyncadd [#allocation10], 4294965184  ;;  %v3128_v0 = vmov 0.0   ;;  %v264_v1 = vld [vmem:[#allocation6 + $0x1e8] sm:$0xff]  ;;  %v263_v2 = vld [vmem:[#allocation6 + $0x1e0] sm:$0xff] }
  0x3e   :  { %331 = vmatprep.mubr.f32.mxu1 %v3128_v0  ;;  %498 = vmatprep.mubr.f32.mxu0 %v3128_v0  ;;  %v260_v3 = vld [vmem:[#allocation6 + $0x1c8] sm:$0xff]  ;;  %v259_v4 = vld [vmem:[#allocation6 + $0x1c0] sm:$0xff]  ;;  %v2270_v33 = vld [vmem:[#allocation3] sm:$0xff] }
  0x3f   :  { %267 = vmatprep.subr.mxu1 %v264_v1  ;;  %v256_v5 = vld [vmem:[#allocation6 + $0x1a8] sm:$0xff]  ;;  %v255_v6 = vld [vmem:[#allocation6 + $0x1a0] sm:$0xff]  ;;  %v266_v34 = vld [vmem:[#allocation6 + $0x1f8] sm:$0xff] }
  0x40   :  { %268 = vmatpush1.msra.mxu1 %v263_v2  ;;  %v252_v7 = vld [vmem:[#allocation6 + $0x188] sm:$0xff]  ;;  %v251_v8 = vld [vmem:[#allocation6 + $0x180] sm:$0xff]  ;;  %v265_v35 = vld [vmem:[#allocation6 + $0x1f0] sm:$0xff] }
  0x41   :  { %269 = vmatprep.subr.mxu1 %v260_v3  ;;  %v248_v9 = vld [vmem:[#allocation6 + $0x168] sm:$0xff]  ;;  %v247_v10 = vld [vmem:[#allocation6 + $0x160] sm:$0xff]  ;;  %v262_v36 = vld [vmem:[#allocation6 + $0x1d8] sm:$0xff] }
  0x42   :  { %270 = vmatpush1.msra.mxu1 %v259_v4  ;;  %v244_v11 = vld [vmem:[#allocation6 + $0x148] sm:$0xff]  ;;  %v243_v12 = vld [vmem:[#allocation6 + $0x140] sm:$0xff]  ;;  %v261_v37 = vld [vmem:[#allocation6 + $0x1d0] sm:$0xff] }
  0x43   :  { %271 = vmatprep.subr.mxu1 %v256_v5  ;;  %v240_v13 = vld [vmem:[#allocation6 + $0x128] sm:$0xff]  ;;  %v239_v14 = vld [vmem:[#allocation6 + $0x120] sm:$0xff]  ;;  %v258_v38 = vld [vmem:[#allocation6 + $0x1b8] sm:$0xff] }
  0x44   :  { %272 = vmatpush1.msra.mxu1 %v255_v6  ;;  %v236_v15 = vld [vmem:[#allocation6 + $0x108] sm:$0xff]  ;;  %v235_v16 = vld [vmem:[#allocation6 + $0x100] sm:$0xff]  ;;  %v257_v39 = vld [vmem:[#allocation6 + $0x1b0] sm:$0xff] }
  0x45   :  { %273 = vmatprep.subr.mxu1 %v252_v7  ;;  %v232_v17 = vld [vmem:[#allocation6 + $0xe8] sm:$0xff]  ;;  %v231_v18 = vld [vmem:[#allocation6 + $0xe0] sm:$0xff]  ;;  %v254_v40 = vld [vmem:[#allocation6 + $0x198] sm:$0xff] }
  0x46   :  { %274 = vmatpush1.msra.mxu1 %v251_v8  ;;  %v228_v19 = vld [vmem:[#allocation6 + $0xc8] sm:$0xff]  ;;  %v227_v20 = vld [vmem:[#allocation6 + $0xc0] sm:$0xff]  ;;  %v253_v41 = vld [vmem:[#allocation6 + $0x190] sm:$0xff] }
  0x47   :  { %275 = vmatprep.subr.mxu1 %v248_v9  ;;  %v224_v21 = vld [vmem:[#allocation6 + $0xa8] sm:$0xff]  ;;  %v223_v22 = vld [vmem:[#allocation6 + $0xa0] sm:$0xff]  ;;  %v250_v42 = vld [vmem:[#allocation6 + $0x178] sm:$0xff] }
  0x48   :  { %276 = vmatpush1.msra.mxu1 %v247_v10  ;;  %v220_v23 = vld [vmem:[#allocation6 + $0x88] sm:$0xff]  ;;  %v219_v24 = vld [vmem:[#allocation6 + $0x80] sm:$0xff]  ;;  %v249_v43 = vld [vmem:[#allocation6 + $0x170] sm:$0xff] }
  0x49   :  { %277 = vmatprep.subr.mxu1 %v244_v11  ;;  %v216_v25 = vld [vmem:[#allocation6 + $0x68] sm:$0xff]  ;;  %v215_v26 = vld [vmem:[#allocation6 + $0x60] sm:$0xff]  ;;  %v246_v44 = vld [vmem:[#allocation6 + $0x158] sm:$0xff] }
  0x4a   :  { %278 = vmatpush1.msra.mxu1 %v243_v12  ;;  %v212_v27 = vld [vmem:[#allocation6 + $0x48] sm:$0xff]  ;;  %v211_v28 = vld [vmem:[#allocation6 + $0x40] sm:$0xff]  ;;  %v245_v45 = vld [vmem:[#allocation6 + $0x150] sm:$0xff] }
  0x4b   :  { %279 = vmatprep.subr.mxu1 %v240_v13  ;;  %v208_v29 = vld [vmem:[#allocation6 + $0x28] sm:$0xff]  ;;  %v207_v30 = vld [vmem:[#allocation6 + $0x20] sm:$0xff]  ;;  %v242_v46 = vld [vmem:[#allocation6 + $0x138] sm:$0xff] }
  0x4c   :  { %280 = vmatpush1.msra.mxu1 %v239_v14  ;;  %v204_v31 = vld [vmem:[#allocation6 + $0x8] sm:$0xff]  ;;  %v203_v32 = vld [vmem:[#allocation6] sm:$0xff]  ;;  %v241_v47 = vld [vmem:[#allocation6 + $0x130] sm:$0xff] }
  0x4d   :  { %281 = vmatprep.subr.mxu1 %v236_v15  ;;  %v238_v48 = vld [vmem:[#allocation6 + $0x118] sm:$0xff]  ;;  %v237_v49 = vld [vmem:[#allocation6 + $0x110] sm:$0xff]  ;;  %v2276_v3 = vld [vmem:[#allocation8 + $0x1e8] sm:$0xff] }
  0x4e   :  { %282 = vmatpush1.msra.mxu1 %v235_v16  ;;  %v234_v50 = vld [vmem:[#allocation6 + $0xf8] sm:$0xff]  ;;  %v233_v51 = vld [vmem:[#allocation6 + $0xf0] sm:$0xff]  ;;  %3213 = vst [vmem:[#allocation17_spill] sm:$0xff] %v2276_v3  ;;  %434 = vmatprep.subr.mxu0 %v2276_v3  ;;  %v2282_v5 = vld [vmem:[#allocation8 + $0x1e0] sm:$0xff] }
  0x4f   :  { %283 = vmatprep.subr.mxu1 %v232_v17  ;;  %v230_v52 = vld [vmem:[#allocation6 + $0xd8] sm:$0xff]  ;;  %v229_v53 = vld [vmem:[#allocation6 + $0xd0] sm:$0xff]  ;;  %435 = vmatpush1.msra.mxu0 %v2282_v5  ;;  %v2288_v7 = vld [vmem:[#allocation8 + $0x1c8] sm:$0xff] }
  0x50   :  { %284 = vmatpush1.msra.mxu1 %v231_v18  ;;  %v226_v54 = vld [vmem:[#allocation6 + $0xb8] sm:$0xff]  ;;  %v225_v55 = vld [vmem:[#allocation6 + $0xb0] sm:$0xff]  ;;  %436 = vmatprep.subr.mxu0 %v2288_v7  ;;  %v2294_v9 = vld [vmem:[#allocation8 + $0x1c0] sm:$0xff] }
  0x51   :  { %285 = vmatprep.subr.mxu1 %v228_v19  ;;  %v222_v56 = vld [vmem:[#allocation6 + $0x98] sm:$0xff]  ;;  %v221_v57 = vld [vmem:[#allocation6 + $0x90] sm:$0xff]  ;;  %437 = vmatpush1.msra.mxu0 %v2294_v9  ;;  %v2300_v11 = vld [vmem:[#allocation8 + $0x1a8] sm:$0xff] }
  0x52   :  { %286 = vmatpush1.msra.mxu1 %v227_v20  ;;  %v218_v58 = vld [vmem:[#allocation6 + $0x78] sm:$0xff]  ;;  %v217_v59 = vld [vmem:[#allocation6 + $0x70] sm:$0xff]  ;;  %438 = vmatprep.subr.mxu0 %v2300_v11  ;;  %v2306_v13 = vld [vmem:[#allocation8 + $0x1a0] sm:$0xff] }
  0x53   :  { %287 = vmatprep.subr.mxu1 %v224_v21  ;;  %v214_v60 = vld [vmem:[#allocation6 + $0x58] sm:$0xff]  ;;  %v213_v61 = vld [vmem:[#allocation6 + $0x50] sm:$0xff]  ;;  %439 = vmatpush1.msra.mxu0 %v2306_v13  ;;  %v2312_v15 = vld [vmem:[#allocation8 + $0x188] sm:$0xff] }
  0x54   :  { %288 = vmatpush1.msra.mxu1 %v223_v22  ;;  %v210_v62 = vld [vmem:[#allocation6 + $0x38] sm:$0xff]  ;;  %v209_v63 = vld [vmem:[#allocation6 + $0x30] sm:$0xff]  ;;  %440 = vmatprep.subr.mxu0 %v2312_v15  ;;  %v2318_v17 = vld [vmem:[#allocation8 + $0x180] sm:$0xff] }
  0x55   :  { %289 = vmatprep.subr.mxu1 %v220_v23  ;;  %v206_v1 = vld [vmem:[#allocation6 + $0x18] sm:$0xff]  ;;  %v205_v2 = vld [vmem:[#allocation6 + $0x10] sm:$0xff]  ;;  %441 = vmatpush1.msra.mxu0 %v2318_v17  ;;  %v2324_v19 = vld [vmem:[#allocation8 + $0x168] sm:$0xff] }
  0x56   :  { %290 = vmatpush1.msra.mxu1 %v219_v24  ;;  %v2278_v4 = vld [vmem:[#allocation8 + $0x1f8] sm:$0xff]  ;;  %v2284_v6 = vld [vmem:[#allocation8 + $0x1f0] sm:$0xff]  ;;  %442 = vmatprep.subr.mxu0 %v2324_v19  ;;  %v2330_v21 = vld [vmem:[#allocation8 + $0x160] sm:$0xff] }
  0x57   :  { %291 = vmatprep.subr.mxu1 %v216_v25  ;;  %3214 = vst [vmem:[#allocation18_spill] sm:$0xff] %v2278_v4  ;;  %v2290_v8 = vld [vmem:[#allocation8 + $0x1d8] sm:$0xff]  ;;  %v2296_v10 = vld [vmem:[#allocation8 + $0x1d0] sm:$0xff]  ;;  %443 = vmatpush1.msra.mxu0 %v2330_v21  ;;  %v2336_v23 = vld [vmem:[#allocation8 + $0x148] sm:$0xff] }
  0x58   :  { %292 = vmatpush1.msra.mxu1 %v215_v26  ;;  %v2302_v12 = vld [vmem:[#allocation8 + $0x1b8] sm:$0xff]  ;;  %v2308_v14 = vld [vmem:[#allocation8 + $0x1b0] sm:$0xff]  ;;  %444 = vmatprep.subr.mxu0 %v2336_v23  ;;  %v2342_v25 = vld [vmem:[#allocation8 + $0x140] sm:$0xff] }
  0x59   :  { %293 = vmatprep.subr.mxu1 %v212_v27  ;;  %v2314_v16 = vld [vmem:[#allocation8 + $0x198] sm:$0xff]  ;;  %v2320_v18 = vld [vmem:[#allocation8 + $0x190] sm:$0xff]  ;;  %445 = vmatpush1.msra.mxu0 %v2342_v25  ;;  %v2348_v27 = vld [vmem:[#allocation8 + $0x128] sm:$0xff] }
  0x5a   :  { %294 = vmatpush1.msra.mxu1 %v211_v28  ;;  %v2326_v20 = vld [vmem:[#allocation8 + $0x178] sm:$0xff]  ;;  %v2332_v22 = vld [vmem:[#allocation8 + $0x170] sm:$0xff]  ;;  %446 = vmatprep.subr.mxu0 %v2348_v27 }
  0x5b   :  { %295 = vmatprep.subr.mxu1 %v208_v29  ;;  %v2338_v24 = vld [vmem:[#allocation8 + $0x158] sm:$0xff]  ;;  %v2344_v26 = vld [vmem:[#allocation8 + $0x150] sm:$0xff]  ;;  %v2354_v29 = vld [vmem:[#allocation8 + $0x120] sm:$0xff] }
  0x5c   :  { %296 = vmatpush1.msra.mxu1 %v207_v30  ;;  %v2350_v28 = vld [vmem:[#allocation8 + $0x138] sm:$0xff]  ;;  %v2356_v30 = vld [vmem:[#allocation8 + $0x130] sm:$0xff]  ;;  %447 = vmatpush1.msra.mxu0 %v2354_v29 }
  0x5d   :  { %297 = vmatprep.subr.mxu1 %v204_v31  ;;  %v2360_v31 = vld [vmem:[#allocation8 + $0x108] sm:$0xff] }
  0x5e   :  { %298 = vmatpush1.msra.mxu1 %v203_v32  ;;  %v2362_v32 = vld [vmem:[#allocation8 + $0x118] sm:$0xff]  ;;  %448 = vmatprep.subr.mxu0 %v2360_v31 }
  0x5f   :  { %332 = vmatmul.mubr.f32.vlgmr.msra.gmra.mxu1 %v2270_v33  ;;  %338 = vmatprep.subr.mxu1 %v266_v34  ;;  %v2368_v34 = vld [vmem:[#allocation8 + $0x110] sm:$0xff] }
  0x60   :  { %339 = vmatpush1.msra.mxu1 %v265_v35  ;;  %402 = vmatprep.mubr.f32.mxu1 %v3128_v0  ;;  %v2370_v35 = vld [vmem:[#allocation8 + $0xe8] sm:$0xff] }
  0x61   :  { %340 = vmatprep.subr.mxu1 %v262_v36  ;;  %v2374_v36 = vld [vmem:[#allocation8 + $0xf8] sm:$0xff] }
  0x62   :  { %341 = vmatpush1.msra.mxu1 %v261_v37  ;;  %v2376_v37 = vld [vmem:[#allocation8 + $0xe0] sm:$0xff] }
  0x63   :  { %342 = vmatprep.subr.mxu1 %v258_v38  ;;  %v2378_v38 = vld [vmem:[#allocation8 + $0xf0] sm:$0xff] }
  0x64   :  { %343 = vmatpush1.msra.mxu1 %v257_v39  ;;  %v2382_v39 = vld [vmem:[#allocation8 + $0xc8] sm:$0xff] }
  0x65   :  { %344 = vmatprep.subr.mxu1 %v254_v40  ;;  %v2384_v40 = vld [vmem:[#allocation8 + $0xd8] sm:$0xff] }
  0x66   :  { %345 = vmatpush1.msra.mxu1 %v253_v41  ;;  %v2386_v41 = vld [vmem:[#allocation8 + $0xc0] sm:$0xff] }
  0x67   :  { %346 = vmatprep.subr.mxu1 %v250_v42  ;;  %v2390_v42 = vld [vmem:[#allocation8 + $0xd0] sm:$0xff] }
  0x68   :  { %347 = vmatpush1.msra.mxu1 %v249_v43  ;;  %v2392_v43 = vld [vmem:[#allocation8 + $0xa8] sm:$0xff] }
  0x69   :  { %348 = vmatprep.subr.mxu1 %v246_v44  ;;  %v2394_v44 = vld [vmem:[#allocation8 + $0xb8] sm:$0xff] }
  0x6a   :  { %349 = vmatpush1.msra.mxu1 %v245_v45  ;;  %v2398_v45 = vld [vmem:[#allocation8 + $0xa0] sm:$0xff] }
  0x6b   :  { %350 = vmatprep.subr.mxu1 %v242_v46  ;;  %v2400_v46 = vld [vmem:[#allocation8 + $0xb0] sm:$0xff] }
  0x6c   :  { %351 = vmatpush1.msra.mxu1 %v241_v47  ;;  %v2404_v47 = vld [vmem:[#allocation8 + $0x88] sm:$0xff] }
  0x6d   :  { %352 = vmatprep.subr.mxu1 %v238_v48  ;;  %v2406_v48 = vld [vmem:[#allocation8 + $0x98] sm:$0xff] }
  0x6e   :  { %353 = vmatpush1.msra.mxu1 %v237_v49  ;;  %3215 = vst [vmem:[#allocation19_spill] sm:$0xff] %v2406_v48  ;;  %v2410_v49 = vld [vmem:[#allocation8 + $0x80] sm:$0xff] }
  0x6f   :  { %354 = vmatprep.subr.mxu1 %v234_v50  ;;  %3216 = vst [vmem:[#allocation20_spill] sm:$0xff] %v2410_v49  ;;  %v2412_v50 = vld [vmem:[#allocation8 + $0x90] sm:$0xff] }
  0x70   :  { %355 = vmatpush1.msra.mxu1 %v233_v51  ;;  %3217 = vst [vmem:[#allocation21_spill] sm:$0xff] %v2412_v50  ;;  %v2416_v51 = vld [vmem:[#allocation8 + $0x68] sm:$0xff] }
  0x71   :  { %356 = vmatprep.subr.mxu1 %v230_v52  ;;  %3218 = vst [vmem:[#allocation22_spill] sm:$0xff] %v2416_v51  ;;  %v2418_v52 = vld [vmem:[#allocation8 + $0x78] sm:$0xff] }
  0x72   :  { %357 = vmatpush1.msra.mxu1 %v229_v53  ;;  %3219 = vst [vmem:[#allocation23_spill] sm:$0xff] %v2418_v52  ;;  %v2422_v53 = vld [vmem:[#allocation8 + $0x60] sm:$0xff] }
  0x73   :  { %358 = vmatprep.subr.mxu1 %v226_v54  ;;  %3220 = vst [vmem:[#allocation24_spill] sm:$0xff] %v2422_v53  ;;  %v2424_v54 = vld [vmem:[#allocation8 + $0x70] sm:$0xff] }
  0x74   :  { %359 = vmatpush1.msra.mxu1 %v225_v55  ;;  %3221 = vst [vmem:[#allocation25_spill] sm:$0xff] %v2424_v54  ;;  %v2428_v55 = vld [vmem:[#allocation8 + $0x48] sm:$0xff] }
  0x75   :  { %360 = vmatprep.subr.mxu1 %v222_v56  ;;  %3222 = vst [vmem:[#allocation26_spill] sm:$0xff] %v2428_v55  ;;  %v2430_v56 = vld [vmem:[#allocation8 + $0x58] sm:$0xff] }
  0x76   :  { %361 = vmatpush1.msra.mxu1 %v221_v57  ;;  %3223 = vst [vmem:[#allocation27_spill] sm:$0xff] %v2430_v56  ;;  %v2434_v57 = vld [vmem:[#allocation8 + $0x40] sm:$0xff] }
  0x77   :  { %362 = vmatprep.subr.mxu1 %v218_v58  ;;  %3224 = vst [vmem:[#allocation28_spill] sm:$0xff] %v2434_v57  ;;  %v2436_v58 = vld [vmem:[#allocation8 + $0x50] sm:$0xff] }
  0x78   :  { %363 = vmatpush1.msra.mxu1 %v217_v59  ;;  %3225 = vst [vmem:[#allocation29_spill] sm:$0xff] %v2436_v58  ;;  %v2440_v59 = vld [vmem:[#allocation8 + $0x28] sm:$0xff] }
  0x79   :  { %364 = vmatprep.subr.mxu1 %v214_v60  ;;  %3226 = vst [vmem:[#allocation30_spill] sm:$0xff] %v2440_v59  ;;  %v2442_v60 = vld [vmem:[#allocation8 + $0x38] sm:$0xff] }
  0x7a   :  { %365 = vmatpush1.msra.mxu1 %v213_v61  ;;  %3227 = vst [vmem:[#allocation31_spill] sm:$0xff] %v2442_v60  ;;  %v2446_v61 = vld [vmem:[#allocation8 + $0x20] sm:$0xff] }
  0x7b   :  { %366 = vmatprep.subr.mxu1 %v210_v62  ;;  %3228 = vst [vmem:[#allocation32_spill] sm:$0xff] %v2446_v61  ;;  %v2448_v62 = vld [vmem:[#allocation8 + $0x30] sm:$0xff] }
  0x7c   :  { %367 = vmatpush1.msra.mxu1 %v209_v63  ;;  %3229 = vst [vmem:[#allocation33_spill] sm:$0xff] %v2448_v62  ;;  %v2452_v63 = vld [vmem:[#allocation8 + $0x8] sm:$0xff] }
  0x7d   :  { %368 = vmatprep.subr.mxu1 %v206_v1  ;;  %3230 = vst [vmem:[#allocation34_spill] sm:$0xff] %v2452_v63  ;;  %v2454_v1 = vld [vmem:[#allocation8 + $0x18] sm:$0xff] }
  0x7e   :  { %369 = vmatpush1.msra.mxu1 %v205_v2  ;;  %3231 = vst [vmem:[#allocation35_spill] sm:$0xff] %v2454_v1  ;;  %v2458_v2 = vld [vmem:[#allocation8] sm:$0xff] }
  0x7f   :  { %403 = vmatmul.mubr.f32.vlgmr.msra.gmra.mxu1 %v2270_v33  ;;  %505 = vmatprep.subr.mxu1 %v2278_v4  ;;  %v2366_v33 = vld [vmem:[#allocation8 + $0x100] sm:$0xff]  ;;  %3232 = vst [vmem:[#allocation36_spill] sm:$0xff] %v2458_v2 }
  0x80   :  { %569 = vmatprep.mubr.f32.mxu1 %v3128_v0  ;;  %506 = vmatpush1.msra.mxu1 %v2284_v6  ;;  %v2460_v0 = vld [vmem:[#allocation8 + $0x10] sm:$0xff] }
  0x81   :  { %507 = vmatprep.subr.mxu1 %v2290_v8  ;;  %449 = vmatpush1.msra.mxu0 %v2366_v33  ;;  %3233 = vst [vmem:[#allocation37_spill] sm:$0xff] %v2460_v0 }
  0x82   :  { %508 = vmatpush1.msra.mxu1 %v2296_v10  ;;  %450 = vmatprep.subr.mxu0 %v2370_v35 }
  0x83   :  { %509 = vmatprep.subr.mxu1 %v2302_v12  ;;  %451 = vmatpush1.msra.mxu0 %v2376_v37 }
  0x84   :  { %510 = vmatpush1.msra.mxu1 %v2308_v14  ;;  %452 = vmatprep.subr.mxu0 %v2382_v39 }
  0x85   :  { %511 = vmatprep.subr.mxu1 %v2314_v16  ;;  %453 = vmatpush1.msra.mxu0 %v2386_v41 }
  0x86   :  { %512 = vmatpush1.msra.mxu1 %v2320_v18  ;;  %454 = vmatprep.subr.mxu0 %v2392_v43 }
  0x87   :  { %513 = vmatprep.subr.mxu1 %v2326_v20  ;;  %455 = vmatpush1.msra.mxu0 %v2398_v45 }
  0x88   :  { %514 = vmatpush1.msra.mxu1 %v2332_v22  ;;  %456 = vmatprep.subr.mxu0 %v2404_v47 }
  0x89   :  { %515 = vmatprep.subr.mxu1 %v2338_v24  ;;  %457 = vmatpush1.msra.mxu0 %v2410_v49 }
  0x8a   :  { %516 = vmatpush1.msra.mxu1 %v2344_v26  ;;  %458 = vmatprep.subr.mxu0 %v2416_v51 }
  0x8b   :  { %517 = vmatprep.subr.mxu1 %v2350_v28  ;;  %459 = vmatpush1.msra.mxu0 %v2422_v53 }
  0x8c   :  { %518 = vmatpush1.msra.mxu1 %v2356_v30  ;;  %460 = vmatprep.subr.mxu0 %v2428_v55 }
  0x8d   :  { %519 = vmatprep.subr.mxu1 %v2362_v32  ;;  %461 = vmatpush1.msra.mxu0 %v2434_v57 }
  0x8e   :  { %520 = vmatpush1.msra.mxu1 %v2368_v34  ;;  %462 = vmatprep.subr.mxu0 %v2440_v59 }
  0x8f   :  { %521 = vmatprep.subr.mxu1 %v2374_v36  ;;  %463 = vmatpush1.msra.mxu0 %v2446_v61 }
  0x90   :  { %522 = vmatpush1.msra.mxu1 %v2378_v38  ;;  %464 = vmatprep.subr.mxu0 %v2452_v63 }
  0x91   :  { %523 = vmatprep.subr.mxu1 %v2384_v40  ;;  %465 = vmatpush1.msra.mxu0 %v2458_v2 }
  0x92   :  { %524 = vmatpush1.msra.mxu1 %v2390_v42  ;;  %601 = vmatprep.subr.mxu0 %v2276_v3 }
  0x93   :  { %525 = vmatprep.subr.mxu1 %v2394_v44 }
  0x94   :  { %526 = vmatpush1.msra.mxu1 %v2400_v46 }
  0x95   :  { %527 = vmatprep.subr.mxu1 %v2406_v48 }
  0x96   :  { %528 = vmatpush1.msra.mxu1 %v2412_v50 }
  0x97   :  { %529 = vmatprep.subr.mxu1 %v2418_v52 }
  0x98   :  { %530 = vmatpush1.msra.mxu1 %v2424_v54 }
  0x99   :  { %531 = vmatprep.subr.mxu1 %v2430_v56 }
  0x9a   :  { %532 = vmatpush1.msra.mxu1 %v2436_v58 }
  0x9b   :  { %533 = vmatprep.subr.mxu1 %v2442_v60  ;;  %v159_v60 = vlaneseq }
  0x9c   :  { %534 = vmatpush1.msra.mxu1 %v2448_v62  ;;  %v179_v62 = vld [vmem:[%s3123_s3] sm:$0xf] }
  0x9d   :  { %535 = vmatprep.subr.mxu1 %v2454_v1  ;;  %v2470_v59 = vshrl.u32 %v159_v60, 7 }
  0x9e   :  { %536 = vmatpush1.msra.mxu1 %v2460_v0 }
  0x9f   :  { %672 = vmatprep.subr.mxu1 %v2278_v4  ;;  %3234 = vst [vmem:[#allocation38_spill] sm:$0xff] %v2470_v59  ;;  %v3164_v58 = vsub.s32 0, %v2470_v59  ;;  %v3165_v63 = vsub.s32 1, %v2470_v59  ;;  %v3172_v56 = vsub.s32 2, %v2470_v59  ;;  %v3177_v55 = vsub.s32 3, %v2470_v59 }
  0xa1   :  { %v184_v2 = vrot.slane %v179_v62, %v3164_v58  ;;  %v188_v3 = vrot.slane %v179_v62, %v3165_v63  ;;  %v192_v52 = vrot.slane %v179_v62, %v3172_v56  ;;  %v196_v63 = vrot.slane %v179_v62, %v3177_v55  ;;  %v3241_v62 = vld [vmem:[#allocation24_spill] sm:$0xff] }
  0xa2   :  { %v3254_v55 = vmov 0.0  }
 0x11f   :  { %v333_v1 = vpop.f32.mrf.mxu1 }
 0x120   :  { %v334_v4 = vadd.f32 %v333_v1, %v184_v2 }
 0x121   :  { %v335_v0 = vpop.f32.mrf.mxu1 }
 0x122   :  { %v336_v61 = vadd.f32 %v335_v0, %v188_v3  ;;  %v1766_v60 = vmul.f32 -1.442695, %v334_v4 }
 0x124   :  { %v1767_v57 = vmul.f32 -1.442695, %v336_v61  ;;  %1870 = vpow2.f32 %v1766_v60  ;;  %v202_v60 = vld [vmem:[#allocation3 + $0x8] sm:$0xff] }
 0x126   :  { %1872 = vpow2.f32 %v1767_v57 }
 0x131   :  { %v1871_v54 = vpop.eup %1870 }
 0x132   :  { %v418_v58 = vadd.f32 1.0, %v1871_v54 }
 0x133   :  { %v1873_v53 = vpop.eup %1872 }
 0x134   :  { %v419_v51 = vadd.f32 1.0, %v1873_v53  ;;  %1874 = vrcp.f32 %v418_v58 }
 0x136   :  { %1876 = vrcp.f32 %v419_v51  ;;  %v3239_v51 = vld [vmem:[#allocation22_spill] sm:$0xff] }
 0x13f   :  { %v404_v1 = vpop.f32.mrf.mxu1 }
 0x140   :  { %v405_v0 = vadd.f32 %v404_v1, %v192_v52  ;;  %v3243_v1 = vld [vmem:[#allocation26_spill] sm:$0xff] }
 0x141   :  { %v406_v3 = vpop.f32.mrf.mxu1  ;;  %v1875_v61 = vpop.eup %1874 }
 0x142   :  { %v1768_v4 = vmul.f32 -1.442695, %v405_v0  ;;  %v407_v57 = vadd.f32 %v406_v3, %v196_v63  ;;  %v3242_v63 = vld [vmem:[#allocation25_spill] sm:$0xff]  ;;  %v3244_v0 = vld [vmem:[#allocation27_spill] sm:$0xff]  ;;  %v3245_v3 = vld [vmem:[#allocation28_spill] sm:$0xff] }
 0x143   :  { %v1877_v2 = vpop.eup %1876 }
 0x144   :  { %1878 = vpow2.f32 %v1768_v4  ;;  %v428_v54 = vmul.f32 %v1877_v2, %v202_v60  ;;  %v3246_v4 = vld [vmem:[#allocation29_spill] sm:$0xff]  ;;  %v3249_v2 = vld [vmem:[#allocation32_spill] sm:$0xff] }
 0x145   :  { %1880 = vtanh.f32 %v407_v57  ;;  %v3247_v57 = vld [vmem:[#allocation30_spill] sm:$0xff]  ;;  %v3250_v60 = vld [vmem:[#allocation33_spill] sm:$0xff] }
 0x151   :  { %v1879_v50 = vpop.eup %1878 }
 0x152   :  { %v1881_v49 = vpop.eup %1880  ;;  %v420_v56 = vadd.f32 1.0, %v1879_v50  ;;  %v3238_v50 = vld [vmem:[#allocation21_spill] sm:$0xff] }
 0x153   :  { %v429_v48 = vmul.f32 %v1881_v49, %v1875_v61  ;;  %v3237_v49 = vld [vmem:[#allocation20_spill] sm:$0xff]  ;;  %v3248_v61 = vld [vmem:[#allocation31_spill] sm:$0xff] }
 0x154   :  { %1882 = vrcp.f32 %v420_v56  ;;  %v3240_v56 = vld [vmem:[#allocation23_spill] sm:$0xff] }
 0x155   :  { %v2487_v59 = vadd.f32 %v429_v48, %v428_v54  ;;  %v3236_v48 = vld [vmem:[#allocation19_spill] sm:$0xff]  ;;  %v3251_v54 = vld [vmem:[#allocation34_spill] sm:$0xff] }
 0x157   :  { %1884 = vtanh.f32 %v2487_v59 }
 0x161   :  { %v1883_v52 = vpop.eup %1882 }
 0x164   :  { %v1885_v53 = vpop.eup %1884 }
 0x165   :  { %v2490_v58 = vmul.f32 %v1885_v53, %v1883_v52  ;;  %v3252_v52 = vld [vmem:[#allocation35_spill] sm:$0xff]  ;;  %v3253_v53 = vld [vmem:[#allocation36_spill] sm:$0xff] }
 0x167   :  { %3235 = vst [vmem:[#allocation39_spill] sm:$0xff] %v2490_v58  ;;  %499 = vmatmul.mubr.f32.vlgmr.msra.gmra.mxu0 %v2490_v58  ;;  %570 = vmatmul.mubr.f32.vlgmr.msra.gmra.mxu1 %v2490_v58  ;;  %v3255_v58 = vld [vmem:[#allocation37_spill] sm:$0xff] }
 0x168   :  { %602 = vmatpush1.msra.mxu0 %v2282_v5  ;;  %673 = vmatpush1.msra.mxu1 %v2284_v6 }
 0x169   :  { %603 = vmatprep.subr.mxu0 %v2288_v7  ;;  %674 = vmatprep.subr.mxu1 %v2290_v8 }
 0x16a   :  { %604 = vmatpush1.msra.mxu0 %v2294_v9  ;;  %675 = vmatpush1.msra.mxu1 %v2296_v10 }
 0x16b   :  { %605 = vmatprep.subr.mxu0 %v2300_v11  ;;  %676 = vmatprep.subr.mxu1 %v2302_v12 }
 0x16c   :  { %606 = vmatpush1.msra.mxu0 %v2306_v13  ;;  %677 = vmatpush1.msra.mxu1 %v2308_v14 }
 0x16d   :  { %607 = vmatprep.subr.mxu0 %v2312_v15  ;;  %678 = vmatprep.subr.mxu1 %v2314_v16 }
 0x16e   :  { %608 = vmatpush1.msra.mxu0 %v2318_v17  ;;  %679 = vmatpush1.msra.mxu1 %v2320_v18 }
 0x16f   :  { %609 = vmatprep.subr.mxu0 %v2324_v19  ;;  %680 = vmatprep.subr.mxu1 %v2326_v20 }
 0x170   :  { %610 = vmatpush1.msra.mxu0 %v2330_v21  ;;  %681 = vmatpush1.msra.mxu1 %v2332_v22 }
 0x171   :  { %611 = vmatprep.subr.mxu0 %v2336_v23  ;;  %682 = vmatprep.subr.mxu1 %v2338_v24 }
 0x172   :  { %612 = vmatpush1.msra.mxu0 %v2342_v25  ;;  %683 = vmatpush1.msra.mxu1 %v2344_v26 }
 0x173   :  { %613 = vmatprep.subr.mxu0 %v2348_v27  ;;  %684 = vmatprep.subr.mxu1 %v2350_v28 }
 0x174   :  { %614 = vmatpush1.msra.mxu0 %v2354_v29  ;;  %685 = vmatpush1.msra.mxu1 %v2356_v30 }
 0x175   :  { %615 = vmatprep.subr.mxu0 %v2360_v31  ;;  %686 = vmatprep.subr.mxu1 %v2362_v32 }
 0x176   :  { %616 = vmatpush1.msra.mxu0 %v2366_v33  ;;  %687 = vmatpush1.msra.mxu1 %v2368_v34 }
 0x177   :  { %617 = vmatprep.subr.mxu0 %v2370_v35  ;;  %688 = vmatprep.subr.mxu1 %v2374_v36 }
 0x178   :  { %618 = vmatpush1.msra.mxu0 %v2376_v37  ;;  %689 = vmatpush1.msra.mxu1 %v2378_v38 }
 0x179   :  { %619 = vmatprep.subr.mxu0 %v2382_v39  ;;  %690 = vmatprep.subr.mxu1 %v2384_v40 }
 0x17a   :  { %620 = vmatpush1.msra.mxu0 %v2386_v41  ;;  %691 = vmatpush1.msra.mxu1 %v2390_v42 }
 0x17b   :  { %621 = vmatprep.subr.mxu0 %v2392_v43  ;;  %692 = vmatprep.subr.mxu1 %v2394_v44 }
 0x17c   :  { %622 = vmatpush1.msra.mxu0 %v2398_v45  ;;  %693 = vmatpush1.msra.mxu1 %v2400_v46 }
 0x17d   :  { %623 = vmatprep.subr.mxu0 %v2404_v47  ;;  %694 = vmatprep.subr.mxu1 %v3236_v48 }
 0x17e   :  { %624 = vmatpush1.msra.mxu0 %v3237_v49  ;;  %695 = vmatpush1.msra.mxu1 %v3238_v50 }
 0x17f   :  { %625 = vmatprep.subr.mxu0 %v3239_v51  ;;  %696 = vmatprep.subr.mxu1 %v3240_v56 }
 0x180   :  { %626 = vmatpush1.msra.mxu0 %v3241_v62  ;;  %697 = vmatpush1.msra.mxu1 %v3242_v63 }
 0x181   :  { %627 = vmatprep.subr.mxu0 %v3243_v1  ;;  %698 = vmatprep.subr.mxu1 %v3244_v0 }
 0x182   :  { %628 = vmatpush1.msra.mxu0 %v3245_v3  ;;  %699 = vmatpush1.msra.mxu1 %v3246_v4  ;;  %v3256_v4 = vld [vmem:[#allocation17_spill] sm:$0xff] }
 0x183   :  { %629 = vmatprep.subr.mxu0 %v3247_v57  ;;  %700 = vmatprep.subr.mxu1 %v3248_v61  ;;  %v3257_v57 = vld [vmem:[#allocation18_spill] sm:$0xff]  ;;  %v157_v61 = vld [vmem:[#allocation9] sm:$0xf] }
 0x184   :  { %630 = vmatpush1.msra.mxu0 %v3249_v2  ;;  %701 = vmatpush1.msra.mxu1 %v3250_v60  ;;  %v3258_v2 = vld [vmem:[#allocation38_spill] sm:$0xff] }
 0x185   :  { %631 = vmatprep.subr.mxu0 %v3251_v54  ;;  %702 = vmatprep.subr.mxu1 %v3252_v52  ;;  %v3259_v3 = vsub.s32 0, %v3258_v2  ;;  %v3261_v54 = vsub.s32 1, %v3258_v2 }
 0x186   :  { %632 = vmatpush1.msra.mxu0 %v3253_v53  ;;  %665 = vmatprep.mubr.f32.mxu0 %v3254_v55 }
 0x187   :  { %703 = vmatpush1.msra.mxu1 %v3255_v58  ;;  %736 = vmatprep.mubr.f32.mxu1 %v3254_v55  ;;  %v2562_v60 = vrot.slane %v157_v61, %v3259_v3  ;;  %v2566_v52 = vrot.slane %v157_v61, %v3261_v54  ;;  %v3265_v54 = vsub.s32 3, %v3258_v2 }
 0x188   :  { %768 = vmatprep.subr.mxu0 %v3256_v4  ;;  %839 = vmatprep.subr.mxu1 %v3257_v57  ;;  %v3263_v57 = vsub.s32 2, %v3258_v2 }
 0x189   :  { %3260 = vst [vmem:[#allocation19_spill] sm:$0xff] %v2562_v60  ;;  %3262 = vst [vmem:[#allocation20_spill] sm:$0xff] %v2566_v52  ;;  %v2577_v56 = vrot.slane %v157_v61, %v3265_v54 }
 0x18a   :  { %v2572_v63 = vrot.slane %v157_v61, %v3263_v57 }
 0x18c   :  { %3264 = vst [vmem:[#allocation38_spill] sm:$0xff] %v2572_v63 }
 0x227   :  { %v500_v53 = vpop.f32.mrf.mxu0  ;;  %v571_v3 = vpop.f32.mrf.mxu1 }
 0x228   :  { %v501_v0 = vadd.f32 %v500_v53, %v2562_v60  ;;  %v572_v62 = vadd.f32 %v571_v3, %v2572_v63 }
 0x229   :  { %v502_v1 = vpop.f32.mrf.mxu0  ;;  %v573_v51 = vpop.f32.mrf.mxu1 }
 0x22a   :  { %v1769_v58 = vmul.f32 -1.442695, %v501_v0  ;;  %v503_v55 = vadd.f32 %v502_v1, %v2566_v52  ;;  %v1771_v53 = vmul.f32 -1.442695, %v572_v62  ;;  %v574_v0 = vadd.f32 %v573_v51, %v2577_v56 }
 0x22c   :  { %1886 = vpow2.f32 %v1769_v58  ;;  %v1770_v4 = vmul.f32 -1.442695, %v503_v55 }
 0x22e   :  { %1888 = vpow2.f32 %v1770_v4 }
 0x22f   :  { %1890 = vpow2.f32 %v1771_v53  ;;  %v3270_v53 = vld [vmem:[#allocation25_spill] sm:$0xff] }
 0x239   :  { %v1887_v60 = vpop.eup %1886 }
 0x23a   :  { %v585_v1 = vadd.f32 1.0, %v1887_v60 }
 0x23b   :  { %v1889_v58 = vpop.eup %1888 }
 0x23c   :  { %1892 = vrcp.f32 %v585_v1  ;;  %v586_v55 = vadd.f32 1.0, %v1889_v58  ;;  %v1891_v4 = vpop.eup %1890  ;;  %v3272_v1 = vld [vmem:[#allocation27_spill] sm:$0xff]  ;;  %v3273_v58 = vld [vmem:[#allocation28_spill] sm:$0xff] }
 0x23d   :  { %1894 = vtanh.f32 %v574_v0  ;;  %v587_v63 = vadd.f32 1.0, %v1891_v4  ;;  %v3271_v0 = vld [vmem:[#allocation26_spill] sm:$0xff] }
 0x23e   :  { %1896 = vrcp.f32 %v586_v55  ;;  %v3274_v55 = vld [vmem:[#allocation29_spill] sm:$0xff]  ;;  %v3275_v4 = vld [vmem:[#allocation30_spill] sm:$0xff] }
 0x23f   :  { %1898 = vrcp.f32 %v587_v63  ;;  %v3268_v63 = vld [vmem:[#allocation23_spill] sm:$0xff] }
 0x249   :  { %v1893_v57 = vpop.eup %1892 }
 0x24a   :  { %v1895_v52 = vpop.eup %1894 }
 0x24b   :  { %v1897_v3 = vpop.eup %1896  ;;  %v596_v2 = vmul.f32 %v1895_v52, %v1893_v57  ;;  %v3269_v52 = vld [vmem:[#allocation24_spill] sm:$0xff]  ;;  %v3276_v57 = vld [vmem:[#allocation31_spill] sm:$0xff] }
 0x24c   :  { %v595_v61 = vmul.f32 %v1897_v3, %v2487_v59  ;;  %v1899_v51 = vpop.eup %1898  ;;  %v3267_v59 = vld [vmem:[#allocation22_spill] sm:$0xff]  ;;  %v3277_v3 = vld [vmem:[#allocation32_spill] sm:$0xff] }
 0x24e   :  { %v2581_v54 = vadd.f32 %v596_v2, %v595_v61  ;;  %v3278_v61 = vld [vmem:[#allocation33_spill] sm:$0xff]  ;;  %v3279_v2 = vld [vmem:[#allocation34_spill] sm:$0xff] }
 0x250   :  { %1900 = vtanh.f32 %v2581_v54 }
 0x25d   :  { %v1901_v62 = vpop.eup %1900 }
 0x25e   :  { %v2584_v60 = vmul.f32 %v1901_v62, %v1899_v51  ;;  %v3280_v51 = vld [vmem:[#allocation35_spill] sm:$0xff]  ;;  %v3281_v62 = vld [vmem:[#allocation36_spill] sm:$0xff] }
 0x260   :  { %3266 = vst [vmem:[#allocation40_spill] sm:$0xff] %v2584_v60  ;;  %666 = vmatmul.mubr.f32.vlgmr.msra.gmra.mxu0 %v2584_v60  ;;  %737 = vmatmul.mubr.f32.vlgmr.msra.gmra.mxu1 %v2584_v60  ;;  %v3282_v60 = vmov 0.0  }
 0x261   :  { %769 = vmatpush1.msra.mxu0 %v2282_v5  ;;  %840 = vmatpush1.msra.mxu1 %v2284_v6 }
 0x262   :  { %770 = vmatprep.subr.mxu0 %v2288_v7  ;;  %841 = vmatprep.subr.mxu1 %v2290_v8 }
 0x263   :  { %771 = vmatpush1.msra.mxu0 %v2294_v9  ;;  %842 = vmatpush1.msra.mxu1 %v2296_v10 }
 0x264   :  { %772 = vmatprep.subr.mxu0 %v2300_v11  ;;  %843 = vmatprep.subr.mxu1 %v2302_v12 }
 0x265   :  { %773 = vmatpush1.msra.mxu0 %v2306_v13  ;;  %844 = vmatpush1.msra.mxu1 %v2308_v14 }
 0x266   :  { %774 = vmatprep.subr.mxu0 %v2312_v15  ;;  %845 = vmatprep.subr.mxu1 %v2314_v16 }
 0x267   :  { %775 = vmatpush1.msra.mxu0 %v2318_v17  ;;  %846 = vmatpush1.msra.mxu1 %v2320_v18 }
 0x268   :  { %776 = vmatprep.subr.mxu0 %v2324_v19  ;;  %847 = vmatprep.subr.mxu1 %v2326_v20 }
 0x269   :  { %777 = vmatpush1.msra.mxu0 %v2330_v21  ;;  %848 = vmatpush1.msra.mxu1 %v2332_v22 }
 0x26a   :  { %778 = vmatprep.subr.mxu0 %v2336_v23  ;;  %849 = vmatprep.subr.mxu1 %v2338_v24 }
 0x26b   :  { %779 = vmatpush1.msra.mxu0 %v2342_v25  ;;  %850 = vmatpush1.msra.mxu1 %v2344_v26 }
 0x26c   :  { %780 = vmatprep.subr.mxu0 %v2348_v27  ;;  %851 = vmatprep.subr.mxu1 %v2350_v28 }
 0x26d   :  { %781 = vmatpush1.msra.mxu0 %v2354_v29  ;;  %852 = vmatpush1.msra.mxu1 %v2356_v30 }
 0x26e   :  { %782 = vmatprep.subr.mxu0 %v2360_v31  ;;  %853 = vmatprep.subr.mxu1 %v2362_v32 }
 0x26f   :  { %783 = vmatpush1.msra.mxu0 %v2366_v33  ;;  %854 = vmatpush1.msra.mxu1 %v2368_v34 }
 0x270   :  { %784 = vmatprep.subr.mxu0 %v2370_v35  ;;  %855 = vmatprep.subr.mxu1 %v2374_v36 }
 0x271   :  { %785 = vmatpush1.msra.mxu0 %v2376_v37  ;;  %856 = vmatpush1.msra.mxu1 %v2378_v38 }
 0x272   :  { %786 = vmatprep.subr.mxu0 %v2382_v39  ;;  %857 = vmatprep.subr.mxu1 %v2384_v40 }
 0x273   :  { %787 = vmatpush1.msra.mxu0 %v2386_v41  ;;  %858 = vmatpush1.msra.mxu1 %v2390_v42 }
 0x274   :  { %788 = vmatprep.subr.mxu0 %v2392_v43  ;;  %859 = vmatprep.subr.mxu1 %v2394_v44 }
 0x275   :  { %789 = vmatpush1.msra.mxu0 %v2398_v45  ;;  %860 = vmatpush1.msra.mxu1 %v2400_v46 }
 0x276   :  { %790 = vmatprep.subr.mxu0 %v2404_v47  ;;  %861 = vmatprep.subr.mxu1 %v3236_v48 }
 0x277   :  { %791 = vmatpush1.msra.mxu0 %v3237_v49  ;;  %862 = vmatpush1.msra.mxu1 %v3238_v50 }
 0x278   :  { %792 = vmatprep.subr.mxu0 %v3267_v59  ;;  %863 = vmatprep.subr.mxu1 %v3268_v63 }
 0x279   :  { %793 = vmatpush1.msra.mxu0 %v3269_v52  ;;  %864 = vmatpush1.msra.mxu1 %v3270_v53  ;;  %v3288_v52 = vld [vmem:[#allocation38_spill] sm:$0xff] }
 0x27a   :  { %794 = vmatprep.subr.mxu0 %v3271_v0  ;;  %865 = vmatprep.subr.mxu1 %v3272_v1  ;;  %v3283_v1 = vld [vmem:[#allocation37_spill] sm:$0xff] }
 0x27b   :  { %795 = vmatpush1.msra.mxu0 %v3273_v58  ;;  %866 = vmatpush1.msra.mxu1 %v3274_v55  ;;  %v3284_v55 = vld [vmem:[#allocation17_spill] sm:$0xff] }
 0x27c   :  { %796 = vmatprep.subr.mxu0 %v3275_v4  ;;  %867 = vmatprep.subr.mxu1 %v3276_v57  ;;  %v3285_v4 = vld [vmem:[#allocation18_spill] sm:$0xff] }
 0x27d   :  { %797 = vmatpush1.msra.mxu0 %v3277_v3  ;;  %868 = vmatpush1.msra.mxu1 %v3278_v61  ;;  %v3286_v3 = vld [vmem:[#allocation19_spill] sm:$0xff] }
 0x27e   :  { %798 = vmatprep.subr.mxu0 %v3279_v2  ;;  %869 = vmatprep.subr.mxu1 %v3280_v51  ;;  %v3287_v2 = vld [vmem:[#allocation20_spill] sm:$0xff] }
 0x27f   :  { %799 = vmatpush1.msra.mxu0 %v3281_v62  ;;  %832 = vmatprep.mubr.f32.mxu0 %v3282_v60 }
 0x280   :  { %870 = vmatpush1.msra.mxu1 %v3283_v1  ;;  %903 = vmatprep.mubr.f32.mxu1 %v3282_v60 }
 0x281   :  { %935 = vmatprep.subr.mxu0 %v3284_v55  ;;  %1006 = vmatprep.subr.mxu1 %v3285_v4 }
 0x320   :  { %v667_v57 = vpop.f32.mrf.mxu0  ;;  %v738_v62 = vpop.f32.mrf.mxu1 }
 0x321   :  { %v668_v58 = vadd.f32 %v667_v57, %v3286_v3  ;;  %v739_v63 = vadd.f32 %v738_v62, %v3288_v52 }
 0x322   :  { %v669_v61 = vpop.f32.mrf.mxu0  ;;  %v740_v1 = vpop.f32.mrf.mxu1 }
 0x323   :  { %v1772_v0 = vmul.f32 -1.442695, %v668_v58  ;;  %v670_v53 = vadd.f32 %v669_v61, %v3287_v2  ;;  %v1774_v59 = vmul.f32 -1.442695, %v739_v63  ;;  %v741_v55 = vadd.f32 %v740_v1, %v2577_v56  ;;  %v3292_v1 = vld [vmem:[#allocation23_spill] sm:$0xff] }
 0x325   :  { %1902 = vpow2.f32 %v1772_v0  ;;  %v1773_v51 = vmul.f32 -1.442695, %v670_v53 }
 0x327   :  { %1904 = vpow2.f32 %v1773_v51 }
 0x328   :  { %1906 = vpow2.f32 %v1774_v59 }
 0x332   :  { %v1903_v60 = vpop.eup %1902 }
 0x333   :  { %v752_v50 = vadd.f32 1.0, %v1903_v60 }
 0x334   :  { %v1905_v4 = vpop.eup %1904 }
 0x335   :  { %1908 = vrcp.f32 %v752_v50  ;;  %v753_v57 = vadd.f32 1.0, %v1905_v4  ;;  %v1907_v58 = vpop.eup %1906  ;;  %v3290_v50 = vld [vmem:[#allocation21_spill] sm:$0xff] }
 0x336   :  { %1910 = vtanh.f32 %v741_v55  ;;  %v754_v51 = vadd.f32 1.0, %v1907_v58  ;;  %v3293_v55 = vld [vmem:[#allocation24_spill] sm:$0xff]  ;;  %v3294_v4 = vld [vmem:[#allocation25_spill] sm:$0xff] }
 0x337   :  { %1912 = vrcp.f32 %v753_v57  ;;  %v3296_v57 = vld [vmem:[#allocation27_spill] sm:$0xff]  ;;  %v3297_v58 = vld [vmem:[#allocation28_spill] sm:$0xff] }
 0x338   :  { %1914 = vrcp.f32 %v754_v51  ;;  %v3301_v51 = vld [vmem:[#allocation32_spill] sm:$0xff] }
 0x342   :  { %v1909_v61 = vpop.eup %1908 }
 0x343   :  { %v1911_v0 = vpop.eup %1910 }
 0x344   :  { %v1913_v53 = vpop.eup %1912  ;;  %v763_v62 = vmul.f32 %v1911_v0, %v1909_v61  ;;  %v3298_v61 = vld [vmem:[#allocation29_spill] sm:$0xff]  ;;  %v3299_v0 = vld [vmem:[#allocation30_spill] sm:$0xff] }
 0x345   :  { %v762_v2 = vmul.f32 %v1913_v53, %v2581_v54  ;;  %v1915_v60 = vpop.eup %1914  ;;  %v3291_v54 = vld [vmem:[#allocation22_spill] sm:$0xff]  ;;  %v3300_v53 = vld [vmem:[#allocation31_spill] sm:$0xff] }
 0x347   :  { %v2659_v52 = vadd.f32 %v763_v62, %v762_v2  ;;  %v3295_v2 = vld [vmem:[#allocation26_spill] sm:$0xff]  ;;  %v3302_v62 = vld [vmem:[#allocation33_spill] sm:$0xff] }
 0x349   :  { %1916 = vtanh.f32 %v2659_v52 }
 0x356   :  { %v1917_v63 = vpop.eup %1916 }
 0x357   :  { %v2662_v59 = vmul.f32 %v1917_v63, %v1915_v60  ;;  %v3303_v60 = vld [vmem:[#allocation34_spill] sm:$0xff]  ;;  %v3304_v63 = vld [vmem:[#allocation35_spill] sm:$0xff] }
 0x359   :  { %3289 = vst [vmem:[#allocation19_spill] sm:$0xff] %v2662_v59  ;;  %833 = vmatmul.mubr.f32.vlgmr.msra.gmra.mxu0 %v2662_v59  ;;  %904 = vmatmul.mubr.f32.vlgmr.msra.gmra.mxu1 %v2662_v59  ;;  %v3305_v59 = vld [vmem:[#allocation36_spill] sm:$0xff] }
 0x35a   :  { %936 = vmatpush1.msra.mxu0 %v2282_v5  ;;  %1007 = vmatpush1.msra.mxu1 %v2284_v6 }
 0x35b   :  { %937 = vmatprep.subr.mxu0 %v2288_v7  ;;  %1008 = vmatprep.subr.mxu1 %v2290_v8 }
 0x35c   :  { %938 = vmatpush1.msra.mxu0 %v2294_v9  ;;  %1009 = vmatpush1.msra.mxu1 %v2296_v10 }
 0x35d   :  { %939 = vmatprep.subr.mxu0 %v2300_v11  ;;  %1010 = vmatprep.subr.mxu1 %v2302_v12 }
 0x35e   :  { %940 = vmatpush1.msra.mxu0 %v2306_v13  ;;  %1011 = vmatpush1.msra.mxu1 %v2308_v14 }
 0x35f   :  { %941 = vmatprep.subr.mxu0 %v2312_v15  ;;  %1012 = vmatprep.subr.mxu1 %v2314_v16 }
 0x360   :  { %942 = vmatpush1.msra.mxu0 %v2318_v17  ;;  %1013 = vmatpush1.msra.mxu1 %v2320_v18 }
 0x361   :  { %943 = vmatprep.subr.mxu0 %v2324_v19  ;;  %1014 = vmatprep.subr.mxu1 %v2326_v20 }
 0x362   :  { %944 = vmatpush1.msra.mxu0 %v2330_v21  ;;  %1015 = vmatpush1.msra.mxu1 %v2332_v22 }
 0x363   :  { %945 = vmatprep.subr.mxu0 %v2336_v23  ;;  %1016 = vmatprep.subr.mxu1 %v2338_v24 }
 0x364   :  { %946 = vmatpush1.msra.mxu0 %v2342_v25  ;;  %1017 = vmatpush1.msra.mxu1 %v2344_v26 }
 0x365   :  { %947 = vmatprep.subr.mxu0 %v2348_v27  ;;  %1018 = vmatprep.subr.mxu1 %v2350_v28 }
 0x366   :  { %948 = vmatpush1.msra.mxu0 %v2354_v29  ;;  %1019 = vmatpush1.msra.mxu1 %v2356_v30 }
 0x367   :  { %949 = vmatprep.subr.mxu0 %v2360_v31  ;;  %1020 = vmatprep.subr.mxu1 %v2362_v32 }
 0x368   :  { %950 = vmatpush1.msra.mxu0 %v2366_v33  ;;  %1021 = vmatpush1.msra.mxu1 %v2368_v34 }
 0x369   :  { %951 = vmatprep.subr.mxu0 %v2370_v35  ;;  %1022 = vmatprep.subr.mxu1 %v2374_v36 }
 0x36a   :  { %952 = vmatpush1.msra.mxu0 %v2376_v37  ;;  %1023 = vmatpush1.msra.mxu1 %v2378_v38 }
 0x36b   :  { %953 = vmatprep.subr.mxu0 %v2382_v39  ;;  %1024 = vmatprep.subr.mxu1 %v2384_v40 }
 0x36c   :  { %954 = vmatpush1.msra.mxu0 %v2386_v41  ;;  %1025 = vmatpush1.msra.mxu1 %v2390_v42 }
 0x36d   :  { %955 = vmatprep.subr.mxu0 %v2392_v43  ;;  %1026 = vmatprep.subr.mxu1 %v2394_v44 }
 0x36e   :  { %956 = vmatpush1.msra.mxu0 %v2398_v45  ;;  %1027 = vmatpush1.msra.mxu1 %v2400_v46 }
 0x36f   :  { %957 = vmatprep.subr.mxu0 %v2404_v47  ;;  %1028 = vmatprep.subr.mxu1 %v3236_v48 }
 0x370   :  { %958 = vmatpush1.msra.mxu0 %v3237_v49  ;;  %1029 = vmatpush1.msra.mxu1 %v3290_v50 }
 0x371   :  { %959 = vmatprep.subr.mxu0 %v3291_v54  ;;  %1030 = vmatprep.subr.mxu1 %v3292_v1 }
 0x372   :  { %960 = vmatpush1.msra.mxu0 %v3293_v55  ;;  %1031 = vmatpush1.msra.mxu1 %v3294_v4  ;;  %v3311_v55 = vld [vmem:[#allocation38_spill] sm:$0xff] }
 0x373   :  { %961 = vmatprep.subr.mxu0 %v3295_v2  ;;  %1032 = vmatprep.subr.mxu1 %v3296_v57  ;;  %v3306_v2 = vmov 0.0   ;;  %v3307_v57 = vld [vmem:[#allocation37_spill] sm:$0xff] }
 0x374   :  { %962 = vmatpush1.msra.mxu0 %v3297_v58  ;;  %1033 = vmatpush1.msra.mxu1 %v3298_v61  ;;  %v3308_v61 = vld [vmem:[#allocation17_spill] sm:$0xff] }
 0x375   :  { %963 = vmatprep.subr.mxu0 %v3299_v0  ;;  %1034 = vmatprep.subr.mxu1 %v3300_v53  ;;  %v3309_v0 = vld [vmem:[#allocation18_spill] sm:$0xff] }
 0x376   :  { %964 = vmatpush1.msra.mxu0 %v3301_v51  ;;  %1035 = vmatpush1.msra.mxu1 %v3302_v62 }
 0x377   :  { %965 = vmatprep.subr.mxu0 %v3303_v60  ;;  %1036 = vmatprep.subr.mxu1 %v3304_v63  ;;  %v3310_v60 = vld [vmem:[#allocation20_spill] sm:$0xff] }
 0x378   :  { %966 = vmatpush1.msra.mxu0 %v3305_v59  ;;  %999 = vmatprep.mubr.f32.mxu0 %v3306_v2 }
 0x379   :  { %1037 = vmatpush1.msra.mxu1 %v3307_v57  ;;  %1070 = vmatprep.mubr.f32.mxu1 %v3306_v2 }
 0x37a   :  { %1102 = vmatprep.subr.mxu0 %v3308_v61  ;;  %1173 = vmatprep.subr.mxu1 %v3309_v0 }
 0x419   :  { %v834_v53 = vpop.f32.mrf.mxu0  ;;  %v905_v59 = vpop.f32.mrf.mxu1 }
 0x41a   :  { %v835_v51 = vadd.f32 %v834_v53, %v3286_v3  ;;  %v906_v1 = vadd.f32 %v905_v59, %v3311_v55 }
 0x41b   :  { %v836_v62 = vpop.f32.mrf.mxu0  ;;  %v907_v57 = vpop.f32.mrf.mxu1 }
 0x41c   :  { %v1775_v58 = vmul.f32 -1.442695, %v835_v51  ;;  %v837_v4 = vadd.f32 %v836_v62, %v3310_v60  ;;  %v1777_v54 = vmul.f32 -1.442695, %v906_v1  ;;  %v908_v61 = vadd.f32 %v907_v57, %v2577_v56 }
 0x41e   :  { %1918 = vpow2.f32 %v1775_v58  ;;  %v1776_v63 = vmul.f32 -1.442695, %v837_v4 }
 0x420   :  { %1920 = vpow2.f32 %v1776_v63 }
 0x421   :  { %1922 = vpow2.f32 %v1777_v54 }
 0x42b   :  { %v1919_v2 = vpop.eup %1918 }
 0x42c   :  { %v919_v50 = vadd.f32 1.0, %v1919_v2 }
 0x42d   :  { %v1921_v0 = vpop.eup %1920 }
 0x42e   :  { %1924 = vrcp.f32 %v919_v50  ;;  %v920_v53 = vadd.f32 1.0, %v1921_v0  ;;  %v1923_v51 = vpop.eup %1922  ;;  %v2835_v0 = vld [vmem:[#allocation8 + $0x1d8] sm:$0xff] }
 0x42f   :  { %1926 = vtanh.f32 %v908_v61  ;;  %v921_v63 = vadd.f32 1.0, %v1923_v51  ;;  %v2829_v61 = vld [vmem:[#allocation8 + $0x1f0] sm:$0xff] }
 0x430   :  { %1928 = vrcp.f32 %v920_v53  ;;  %v2838_v53 = vld [vmem:[#allocation8 + $0x1c0] sm:$0xff]  ;;  %v2841_v51 = vld [vmem:[#allocation8 + $0x1d0] sm:$0xff] }
 0x431   :  { %1930 = vrcp.f32 %v921_v63  ;;  %v2853_v63 = vld [vmem:[#allocation8 + $0x1b0] sm:$0xff] }
 0x43b   :  { %v1925_v62 = vpop.eup %1924 }
 0x43c   :  { %v1927_v58 = vpop.eup %1926 }
 0x43d   :  { %v1929_v4 = vpop.eup %1928  ;;  %v930_v59 = vmul.f32 %v1927_v58, %v1925_v62  ;;  %v2844_v62 = vld [vmem:[#allocation8 + $0x1a8] sm:$0xff]  ;;  %v2847_v58 = vld [vmem:[#allocation8 + $0x1b8] sm:$0xff] }
 0x43e   :  { %v929_v60 = vmul.f32 %v1929_v4, %v2659_v52  ;;  %v1931_v1 = vpop.eup %1930  ;;  %v2850_v4 = vld [vmem:[#allocation8 + $0x1a0] sm:$0xff] }
 0x440   :  { %v2737_v55 = vadd.f32 %v930_v59, %v929_v60  ;;  %v2826_v60 = vld [vmem:[#allocation8 + $0x1e0] sm:$0xff]  ;;  %v2856_v59 = vld [vmem:[#allocation8 + $0x188] sm:$0xff] }
 0x442   :  { %1932 = vtanh.f32 %v2737_v55 }
 0x44f   :  { %v1933_v2 = vpop.eup %1932 }
 0x450   :  { %v2740_v54 = vmul.f32 %v1933_v2, %v1931_v1  ;;  %v2859_v1 = vld [vmem:[#allocation8 + $0x198] sm:$0xff]  ;;  %v2862_v2 = vld [vmem:[#allocation8 + $0x180] sm:$0xff] }
 0x452   :  { %3312 = vst [vmem:[#allocation17_spill] sm:$0xff] %v2740_v54  ;;  %1000 = vmatmul.mubr.f32.vlgmr.msra.gmra.mxu0 %v2740_v54  ;;  %1071 = vmatmul.mubr.f32.vlgmr.msra.gmra.mxu1 %v2740_v54  ;;  %v2991_v54 = vld [vmem:[#allocation8 + $0x38] sm:$0xff] }
 0x453   :  { %1103 = vmatpush1.msra.mxu0 %v2282_v5  ;;  %1174 = vmatpush1.msra.mxu1 %v2284_v6  ;;  %v3313_v5 = vld [vmem:[#allocation21_spill] sm:$0xff]  ;;  %v3314_v6 = vld [vmem:[#allocation22_spill] sm:$0xff] }
 0x454   :  { %1104 = vmatprep.subr.mxu0 %v2288_v7  ;;  %1175 = vmatprep.subr.mxu1 %v2290_v8  ;;  %v3315_v7 = vld [vmem:[#allocation23_spill] sm:$0xff]  ;;  %v3316_v8 = vld [vmem:[#allocation24_spill] sm:$0xff] }
 0x455   :  { %1105 = vmatpush1.msra.mxu0 %v2294_v9  ;;  %1176 = vmatpush1.msra.mxu1 %v2296_v10  ;;  %v3317_v9 = vld [vmem:[#allocation25_spill] sm:$0xff]  ;;  %v3318_v10 = vld [vmem:[#allocation26_spill] sm:$0xff] }
 0x456   :  { %1106 = vmatprep.subr.mxu0 %v2300_v11  ;;  %1177 = vmatprep.subr.mxu1 %v2302_v12  ;;  %v3319_v11 = vld [vmem:[#allocation27_spill] sm:$0xff]  ;;  %v3320_v12 = vld [vmem:[#allocation28_spill] sm:$0xff] }
 0x457   :  { %1107 = vmatpush1.msra.mxu0 %v2306_v13  ;;  %1178 = vmatpush1.msra.mxu1 %v2308_v14  ;;  %v3321_v13 = vld [vmem:[#allocation29_spill] sm:$0xff]  ;;  %v3322_v14 = vld [vmem:[#allocation30_spill] sm:$0xff] }
 0x458   :  { %1108 = vmatprep.subr.mxu0 %v2312_v15  ;;  %1179 = vmatprep.subr.mxu1 %v2314_v16  ;;  %v3323_v15 = vld [vmem:[#allocation31_spill] sm:$0xff]  ;;  %v3324_v16 = vld [vmem:[#allocation32_spill] sm:$0xff] }
 0x459   :  { %1109 = vmatpush1.msra.mxu0 %v2318_v17  ;;  %1180 = vmatpush1.msra.mxu1 %v2320_v18  ;;  %v3325_v17 = vld [vmem:[#allocation33_spill] sm:$0xff]  ;;  %v3326_v18 = vld [vmem:[#allocation34_spill] sm:$0xff]  ;;  %3344 = vst [vmem:[#allocation31_spill] sm:$0xff] %v2991_v54 }
 0x45a   :  { %1110 = vmatprep.subr.mxu0 %v2324_v19  ;;  %1181 = vmatprep.subr.mxu1 %v2326_v20  ;;  %v3327_v19 = vld [vmem:[#allocation35_spill] sm:$0xff]  ;;  %v3328_v20 = vld [vmem:[#allocation36_spill] sm:$0xff] }
 0x45b   :  { %1111 = vmatpush1.msra.mxu0 %v2330_v21  ;;  %1182 = vmatpush1.msra.mxu1 %v2332_v22  ;;  %v3329_v21 = vmov 0.0   ;;  %v3330_v22 = vld [vmem:[#allocation37_spill] sm:$0xff] }
 0x45c   :  { %1112 = vmatprep.subr.mxu0 %v2336_v23  ;;  %1183 = vmatprep.subr.mxu1 %v2338_v24  ;;  %v2808_v23 = vld [vmem:[#allocation8 + $0x1e8] sm:$0xff]  ;;  %v2811_v24 = vld [vmem:[#allocation8 + $0x1f8] sm:$0xff] }
 0x45d   :  { %1113 = vmatpush1.msra.mxu0 %v2342_v25  ;;  %1184 = vmatpush1.msra.mxu1 %v2344_v26 }
 0x45e   :  { %1114 = vmatprep.subr.mxu0 %v2348_v27  ;;  %1185 = vmatprep.subr.mxu1 %v2350_v28 }
 0x45f   :  { %1115 = vmatpush1.msra.mxu0 %v2354_v29  ;;  %1186 = vmatpush1.msra.mxu1 %v2356_v30  ;;  %v3331_v29 = vld [vmem:[#allocation20_spill] sm:$0xff] }
 0x460   :  { %1116 = vmatprep.subr.mxu0 %v2360_v31  ;;  %1187 = vmatprep.subr.mxu1 %v2362_v32 }
 0x461   :  { %1117 = vmatpush1.msra.mxu0 %v2366_v33  ;;  %1188 = vmatpush1.msra.mxu1 %v2368_v34  ;;  %v3332_v33 = vld [vmem:[#allocation38_spill] sm:$0xff] }
 0x462   :  { %1118 = vmatprep.subr.mxu0 %v2370_v35  ;;  %1189 = vmatprep.subr.mxu1 %v2374_v36 }
 0x463   :  { %1119 = vmatpush1.msra.mxu0 %v2376_v37  ;;  %1190 = vmatpush1.msra.mxu1 %v2378_v38 }
 0x464   :  { %1120 = vmatprep.subr.mxu0 %v2382_v39  ;;  %1191 = vmatprep.subr.mxu1 %v2384_v40 }
 0x465   :  { %1121 = vmatpush1.msra.mxu0 %v2386_v41  ;;  %1192 = vmatpush1.msra.mxu1 %v2390_v42 }
 0x466   :  { %1122 = vmatprep.subr.mxu0 %v2392_v43  ;;  %1193 = vmatprep.subr.mxu1 %v2394_v44 }
 0x467   :  { %1123 = vmatpush1.msra.mxu0 %v2398_v45  ;;  %1194 = vmatpush1.msra.mxu1 %v2400_v46 }
 0x468   :  { %1124 = vmatprep.subr.mxu0 %v2404_v47  ;;  %1195 = vmatprep.subr.mxu1 %v3236_v48 }
 0x469   :  { %1125 = vmatpush1.msra.mxu0 %v3237_v49  ;;  %1196 = vmatpush1.msra.mxu1 %v3313_v5  ;;  %v2865_v5 = vld [vmem:[#allocation8 + $0x190] sm:$0xff] }
 0x46a   :  { %1126 = vmatprep.subr.mxu0 %v3314_v6  ;;  %1197 = vmatprep.subr.mxu1 %v3315_v7  ;;  %v2868_v6 = vld [vmem:[#allocation8 + $0x168] sm:$0xff]  ;;  %v2871_v7 = vld [vmem:[#allocation8 + $0x178] sm:$0xff] }
 0x46b   :  { %1127 = vmatpush1.msra.mxu0 %v3316_v8  ;;  %1198 = vmatpush1.msra.mxu1 %v3317_v9  ;;  %v2874_v8 = vld [vmem:[#allocation8 + $0x160] sm:$0xff]  ;;  %v2877_v9 = vld [vmem:[#allocation8 + $0x170] sm:$0xff] }
 0x46c   :  { %1128 = vmatprep.subr.mxu0 %v3318_v10  ;;  %1199 = vmatprep.subr.mxu1 %v3319_v11  ;;  %v2880_v10 = vld [vmem:[#allocation8 + $0x148] sm:$0xff]  ;;  %v2883_v11 = vld [vmem:[#allocation8 + $0x158] sm:$0xff] }
 0x46d   :  { %1129 = vmatpush1.msra.mxu0 %v3320_v12  ;;  %1200 = vmatpush1.msra.mxu1 %v3321_v13  ;;  %v2886_v12 = vld [vmem:[#allocation8 + $0x140] sm:$0xff]  ;;  %v2889_v13 = vld [vmem:[#allocation8 + $0x150] sm:$0xff] }
 0x46e   :  { %1130 = vmatprep.subr.mxu0 %v3322_v14  ;;  %1201 = vmatprep.subr.mxu1 %v3323_v15  ;;  %v2892_v14 = vld [vmem:[#allocation8 + $0x128] sm:$0xff]  ;;  %v2895_v15 = vld [vmem:[#allocation8 + $0x138] sm:$0xff] }
 0x46f   :  { %1131 = vmatpush1.msra.mxu0 %v3324_v16  ;;  %1202 = vmatpush1.msra.mxu1 %v3325_v17  ;;  %v2898_v16 = vld [vmem:[#allocation8 + $0x120] sm:$0xff]  ;;  %v2901_v17 = vld [vmem:[#allocation8 + $0x130] sm:$0xff] }
 0x470   :  { %1132 = vmatprep.subr.mxu0 %v3326_v18  ;;  %1203 = vmatprep.subr.mxu1 %v3327_v19  ;;  %v2904_v18 = vld [vmem:[#allocation8 + $0x108] sm:$0xff]  ;;  %v2907_v19 = vld [vmem:[#allocation8 + $0x118] sm:$0xff] }
 0x471   :  { %1133 = vmatpush1.msra.mxu0 %v3328_v20  ;;  %1166 = vmatprep.mubr.f32.mxu0 %v3329_v21  ;;  %v2910_v20 = vld [vmem:[#allocation8 + $0x100] sm:$0xff] }
 0x472   :  { %1204 = vmatpush1.msra.mxu1 %v3330_v22  ;;  %1237 = vmatprep.mubr.f32.mxu1 %v3329_v21  ;;  %v2913_v22 = vld [vmem:[#allocation8 + $0x110] sm:$0xff] }
 0x473   :  { %1269 = vmatprep.subr.mxu0 %v2808_v23  ;;  %1340 = vmatprep.subr.mxu1 %v2811_v24 }
 0x512   :  { %v1001_v25 = vpop.f32.mrf.mxu0  ;;  %v1072_v32 = vpop.f32.mrf.mxu1 }
 0x513   :  { %v1002_v26 = vadd.f32 %v1001_v25, %v3286_v3  ;;  %v1073_v34 = vadd.f32 %v1072_v32, %v3332_v33  ;;  %v2916_v25 = vld [vmem:[#allocation8 + $0xe8] sm:$0xff]  ;;  %v2934_v32 = vld [vmem:[#allocation8 + $0xc0] sm:$0xff] }
 0x514   :  { %v1003_v27 = vpop.f32.mrf.mxu0  ;;  %v1074_v35 = vpop.f32.mrf.mxu1 }
 0x515   :  { %v1778_v28 = vmul.f32 -1.442695, %v1002_v26  ;;  %v1004_v30 = vadd.f32 %v1003_v27, %v3331_v29  ;;  %v1780_v36 = vmul.f32 -1.442695, %v1073_v34  ;;  %v1075_v38 = vadd.f32 %v1074_v35, %v2577_v56  ;;  %v2919_v26 = vld [vmem:[#allocation8 + $0xf8] sm:$0xff]  ;;  %v2922_v27 = vld [vmem:[#allocation8 + $0xe0] sm:$0xff] }
 0x516   :  { %v2937_v34 = vld [vmem:[#allocation8 + $0xd0] sm:$0xff]  ;;  %v2940_v35 = vld [vmem:[#allocation8 + $0xa8] sm:$0xff] }
 0x517   :  { %1934 = vpow2.f32 %v1778_v28  ;;  %v1779_v31 = vmul.f32 -1.442695, %v1004_v30  ;;  %v2925_v28 = vld [vmem:[#allocation8 + $0xf0] sm:$0xff]  ;;  %v2928_v30 = vld [vmem:[#allocation8 + $0xc8] sm:$0xff] }
 0x519   :  { %1936 = vpow2.f32 %v1779_v31  ;;  %v2931_v31 = vld [vmem:[#allocation8 + $0xd8] sm:$0xff] }
 0x51a   :  { %1938 = vpow2.f32 %v1780_v36  ;;  %v2943_v36 = vld [vmem:[#allocation8 + $0xb8] sm:$0xff] }
 0x524   :  { %v1935_v37 = vpop.eup %1934 }
 0x525   :  { %v1086_v39 = vadd.f32 1.0, %v1935_v37  ;;  %v2946_v37 = vld [vmem:[#allocation8 + $0xa0] sm:$0xff] }
 0x526   :  { %v1937_v40 = vpop.eup %1936 }
 0x527   :  { %1940 = vrcp.f32 %v1086_v39  ;;  %v1087_v41 = vadd.f32 1.0, %v1937_v40  ;;  %v1939_v42 = vpop.eup %1938  ;;  %v2952_v39 = vld [vmem:[#allocation8 + $0x88] sm:$0xff]  ;;  %v2955_v40 = vld [vmem:[#allocation8 + $0x98] sm:$0xff] }
 0x528   :  { %1942 = vtanh.f32 %v1075_v38  ;;  %v1088_v46 = vadd.f32 1.0, %v1939_v42  ;;  %v2949_v38 = vld [vmem:[#allocation8 + $0xb0] sm:$0xff] }
 0x529   :  { %1944 = vrcp.f32 %v1087_v41  ;;  %v2958_v41 = vld [vmem:[#allocation8 + $0x80] sm:$0xff]  ;;  %v2961_v42 = vld [vmem:[#allocation8 + $0x90] sm:$0xff] }
 0x52a   :  { %1946 = vrcp.f32 %v1088_v46  ;;  %3334 = vst [vmem:[#allocation21_spill] sm:$0xff] %v2961_v42  ;;  %v2973_v46 = vld [vmem:[#allocation8 + $0x70] sm:$0xff] }
 0x52b   :  { %3338 = vst [vmem:[#allocation25_spill] sm:$0xff] %v2973_v46 }
 0x534   :  { %v1941_v43 = vpop.eup %1940 }
 0x535   :  { %v1943_v44 = vpop.eup %1942 }
 0x536   :  { %v1945_v45 = vpop.eup %1944  ;;  %v1097_v48 = vmul.f32 %v1943_v44, %v1941_v43  ;;  %v2964_v43 = vld [vmem:[#allocation8 + $0x68] sm:$0xff]  ;;  %v2967_v44 = vld [vmem:[#allocation8 + $0x78] sm:$0xff] }
 0x537   :  { %v1096_v47 = vmul.f32 %v1945_v45, %v2737_v55  ;;  %v1947_v52 = vpop.eup %1946  ;;  %v2832_v55 = vld [vmem:[#allocation8 + $0x1c8] sm:$0xff]  ;;  %3335 = vst [vmem:[#allocation22_spill] sm:$0xff] %v2964_v43  ;;  %3336 = vst [vmem:[#allocation23_spill] sm:$0xff] %v2967_v44  ;;  %v2970_v45 = vld [vmem:[#allocation8 + $0x60] sm:$0xff] }
 0x538   :  { %3337 = vst [vmem:[#allocation24_spill] sm:$0xff] %v2970_v45 }
 0x539   :  { %v2819_v49 = vadd.f32 %v1097_v48, %v1096_v47  ;;  %v2976_v47 = vld [vmem:[#allocation8 + $0x48] sm:$0xff]  ;;  %v2979_v48 = vld [vmem:[#allocation8 + $0x58] sm:$0xff] }
 0x53a   :  { %3339 = vst [vmem:[#allocation26_spill] sm:$0xff] %v2976_v47  ;;  %3340 = vst [vmem:[#allocation27_spill] sm:$0xff] %v2979_v48 }
 0x53b   :  { %1948 = vtanh.f32 %v2819_v49 }
 0x548   :  { %v1949_v50 = vpop.eup %1948 }
 0x549   :  { %v2822_v57 = vmul.f32 %v1949_v50, %v1947_v52  ;;  %v2982_v52 = vld [vmem:[#allocation8 + $0x40] sm:$0xff]  ;;  %v2985_v50 = vld [vmem:[#allocation8 + $0x50] sm:$0xff] }
 0x54a   :  { %3341 = vst [vmem:[#allocation28_spill] sm:$0xff] %v2982_v52  ;;  %3342 = vst [vmem:[#allocation29_spill] sm:$0xff] %v2985_v50 }
 0x54b   :  { %3333 = vst [vmem:[#allocation18_spill] sm:$0xff] %v2822_v57  ;;  %1167 = vmatmul.mubr.f32.vlgmr.msra.gmra.mxu0 %v2822_v57  ;;  %1238 = vmatmul.mubr.f32.vlgmr.msra.gmra.mxu1 %v2822_v57  ;;  %v2988_v57 = vld [vmem:[#allocation8 + $0x28] sm:$0xff] }
 0x54c   :  { %1270 = vmatpush1.msra.mxu0 %v2826_v60  ;;  %1341 = vmatpush1.msra.mxu1 %v2829_v61  ;;  %3343 = vst [vmem:[#allocation30_spill] sm:$0xff] %v2988_v57 }
 0x54d   :  { %1271 = vmatprep.subr.mxu0 %v2832_v55  ;;  %1342 = vmatprep.subr.mxu1 %v2835_v0 }
 0x54e   :  { %1272 = vmatpush1.msra.mxu0 %v2838_v53  ;;  %1343 = vmatpush1.msra.mxu1 %v2841_v51 }
 0x54f   :  { %1273 = vmatprep.subr.mxu0 %v2844_v62  ;;  %1344 = vmatprep.subr.mxu1 %v2847_v58 }
 0x550   :  { %1274 = vmatpush1.msra.mxu0 %v2850_v4  ;;  %1345 = vmatpush1.msra.mxu1 %v2853_v63 }
 0x551   :  { %1275 = vmatprep.subr.mxu0 %v2856_v59  ;;  %1346 = vmatprep.subr.mxu1 %v2859_v1 }
 0x552   :  { %1276 = vmatpush1.msra.mxu0 %v2862_v2  ;;  %1347 = vmatpush1.msra.mxu1 %v2865_v5 }
 0x553   :  { %1277 = vmatprep.subr.mxu0 %v2868_v6  ;;  %1348 = vmatprep.subr.mxu1 %v2871_v7 }
 0x554   :  { %1278 = vmatpush1.msra.mxu0 %v2874_v8  ;;  %1349 = vmatpush1.msra.mxu1 %v2877_v9 }
 0x555   :  { %1279 = vmatprep.subr.mxu0 %v2880_v10  ;;  %1350 = vmatprep.subr.mxu1 %v2883_v11 }
 0x556   :  { %1280 = vmatpush1.msra.mxu0 %v2886_v12  ;;  %1351 = vmatpush1.msra.mxu1 %v2889_v13 }
 0x557   :  { %1281 = vmatprep.subr.mxu0 %v2892_v14  ;;  %1352 = vmatprep.subr.mxu1 %v2895_v15 }
 0x558   :  { %1282 = vmatpush1.msra.mxu0 %v2898_v16  ;;  %1353 = vmatpush1.msra.mxu1 %v2901_v17 }
 0x559   :  { %1283 = vmatprep.subr.mxu0 %v2904_v18  ;;  %1354 = vmatprep.subr.mxu1 %v2907_v19 }
 0x55a   :  { %1284 = vmatpush1.msra.mxu0 %v2910_v20  ;;  %1355 = vmatpush1.msra.mxu1 %v2913_v22 }
 0x55b   :  { %1285 = vmatprep.subr.mxu0 %v2916_v25  ;;  %1356 = vmatprep.subr.mxu1 %v2919_v26 }
 0x55c   :  { %1286 = vmatpush1.msra.mxu0 %v2922_v27  ;;  %1357 = vmatpush1.msra.mxu1 %v2925_v28 }
 0x55d   :  { %1287 = vmatprep.subr.mxu0 %v2928_v30  ;;  %1358 = vmatprep.subr.mxu1 %v2931_v31 }
 0x55e   :  { %1288 = vmatpush1.msra.mxu0 %v2934_v32  ;;  %1359 = vmatpush1.msra.mxu1 %v2937_v34 }
 0x55f   :  { %1289 = vmatprep.subr.mxu0 %v2940_v35  ;;  %1360 = vmatprep.subr.mxu1 %v2943_v36 }
 0x560   :  { %1290 = vmatpush1.msra.mxu0 %v2946_v37  ;;  %1361 = vmatpush1.msra.mxu1 %v2949_v38 }
 0x561   :  { %1291 = vmatprep.subr.mxu0 %v2952_v39  ;;  %1362 = vmatprep.subr.mxu1 %v2955_v40 }
 0x562   :  { %1292 = vmatpush1.msra.mxu0 %v2958_v41  ;;  %1363 = vmatpush1.msra.mxu1 %v2961_v42 }
 0x563   :  { %1293 = vmatprep.subr.mxu0 %v2964_v43  ;;  %1364 = vmatprep.subr.mxu1 %v2967_v44 }
 0x564   :  { %1294 = vmatpush1.msra.mxu0 %v2970_v45  ;;  %1365 = vmatpush1.msra.mxu1 %v2973_v46 }
 0x565   :  { %1295 = vmatprep.subr.mxu0 %v2976_v47  ;;  %1366 = vmatprep.subr.mxu1 %v2979_v48  ;;  %v2994_v47 = vld [vmem:[#allocation8 + $0x20] sm:$0xff]  ;;  %v2997_v48 = vld [vmem:[#allocation8 + $0x30] sm:$0xff] }
 0x566   :  { %1296 = vmatpush1.msra.mxu0 %v2982_v52  ;;  %1367 = vmatpush1.msra.mxu1 %v2985_v50  ;;  %3345 = vst [vmem:[#allocation32_spill] sm:$0xff] %v2994_v47  ;;  %3346 = vst [vmem:[#allocation33_spill] sm:$0xff] %v2997_v48  ;;  %v3000_v52 = vld [vmem:[#allocation8 + $0x8] sm:$0xff]  ;;  %v3003_v50 = vld [vmem:[#allocation8 + $0x18] sm:$0xff] }
 0x567   :  { %1297 = vmatprep.subr.mxu0 %v2988_v57  ;;  %1368 = vmatprep.subr.mxu1 %v2991_v54  ;;  %3347 = vst [vmem:[#allocation34_spill] sm:$0xff] %v3000_v52  ;;  %3348 = vst [vmem:[#allocation35_spill] sm:$0xff] %v3003_v50  ;;  %v3006_v57 = vld [vmem:[#allocation8] sm:$0xff]  ;;  %v3010_v54 = vld [vmem:[#allocation8 + $0x10] sm:$0xff] }
 0x568   :  { %1298 = vmatpush1.msra.mxu0 %v2994_v47  ;;  %1369 = vmatpush1.msra.mxu1 %v2997_v48  ;;  %3349 = vst [vmem:[#allocation36_spill] sm:$0xff] %v3006_v57  ;;  %3350 = vst [vmem:[#allocation37_spill] sm:$0xff] %v3010_v54 }
 0x569   :  { %1299 = vmatprep.subr.mxu0 %v3000_v52  ;;  %1370 = vmatprep.subr.mxu1 %v3003_v50 }
 0x56a   :  { %1300 = vmatpush1.msra.mxu0 %v3006_v57  ;;  %1333 = vmatprep.mubr.f32.mxu0 %v3329_v21 }
 0x56b   :  { %1371 = vmatpush1.msra.mxu1 %v3010_v54  ;;  %1404 = vmatprep.mubr.f32.mxu1 %v3329_v21 }
 0x56c   :  { %1436 = vmatprep.subr.mxu0 %v2808_v23  ;;  %1507 = vmatprep.subr.mxu1 %v2811_v24 }
 0x60b   :  { %v1168_v52 = vpop.f32.mrf.mxu0  ;;  %v1239_v45 = vpop.f32.mrf.mxu1 }
 0x60c   :  { %v1169_v48 = vadd.f32 %v1168_v52, %v3286_v3  ;;  %v1240_v44 = vadd.f32 %v1239_v45, %v3332_v33 }
 0x60d   :  { %v1170_v50 = vpop.f32.mrf.mxu0  ;;  %v1241_v54 = vpop.f32.mrf.mxu1 }
 0x60e   :  { %v1781_v47 = vmul.f32 -1.442695, %v1169_v48  ;;  %v1171_v46 = vadd.f32 %v1170_v50, %v3331_v29  ;;  %v1783_v43 = vmul.f32 -1.442695, %v1240_v44  ;;  %v1242_v23 = vadd.f32 %v1241_v54, %v2577_v56  ;;  %v3371_v44 = vld [vmem:[#allocation39_spill] sm:$0xff] }
 0x610   :  { %1950 = vpow2.f32 %v1781_v47  ;;  %v1782_v57 = vmul.f32 -1.442695, %v1171_v46 }
 0x612   :  { %1952 = vpow2.f32 %v1782_v57 }
 0x613   :  { %1954 = vpow2.f32 %v1783_v43 }
 0x61d   :  { %v1951_v21 = vpop.eup %1950 }
 0x61e   :  { %v1253_v42 = vadd.f32 1.0, %v1951_v21 }
 0x61f   :  { %v1953_v24 = vpop.eup %1952 }
 0x620   :  { %1956 = vrcp.f32 %v1253_v42  ;;  %v1254_v52 = vadd.f32 1.0, %v1953_v24  ;;  %v1955_v48 = vpop.eup %1954  ;;  %v1625_v42 = vld [vmem:[#allocation11 + $0x70] sm:$0xff]  ;;  %v1623_v24 = vld [vmem:[#allocation11 + $0x60] sm:$0xff] }
 0x621   :  { %1958 = vtanh.f32 %v1242_v23  ;;  %v1255_v57 = vadd.f32 1.0, %v1955_v48  ;;  %v1624_v23 = vld [vmem:[#allocation11 + $0x68] sm:$0xff] }
 0x622   :  { %1960 = vrcp.f32 %v1254_v52  ;;  %v1621_v52 = vld [vmem:[#allocation11 + $0x50] sm:$0xff]  ;;  %v1620_v48 = vld [vmem:[#allocation11 + $0x48] sm:$0xff] }
 0x623   :  { %1962 = vrcp.f32 %v1255_v57  ;;  %v1616_v57 = vld [vmem:[#allocation11 + $0x28] sm:$0xff] }
 0x62d   :  { %v1957_v50 = vpop.eup %1956 }
 0x62e   :  { %v1959_v47 = vpop.eup %1958 }
 0x62f   :  { %v1961_v46 = vpop.eup %1960  ;;  %v1264_v45 = vmul.f32 %v1959_v47, %v1957_v50  ;;  %v1619_v50 = vld [vmem:[#allocation11 + $0x40] sm:$0xff]  ;;  %v1618_v47 = vld [vmem:[#allocation11 + $0x38] sm:$0xff] }
 0x630   :  { %v1263_v29 = vmul.f32 %v1961_v46, %v2819_v49  ;;  %v1963_v54 = vpop.eup %1962  ;;  %v3352_v49 = vld [vmem:[#allocation22_spill] sm:$0xff]  ;;  %v1617_v46 = vld [vmem:[#allocation11 + $0x30] sm:$0xff] }
 0x632   :  { %v3021_v33 = vadd.f32 %v1264_v45, %v1263_v29  ;;  %v3351_v29 = vld [vmem:[#allocation21_spill] sm:$0xff] }
 0x633   :  { %v1615_v45 = vld [vmem:[#allocation11 + $0x20] sm:$0xff] }
 0x634   :  { %1964 = vtanh.f32 %v3021_v33 }
 0x641   :  { %v1965_v21 = vpop.eup %1964 }
 0x642   :  { %v3024_v43 = vmul.f32 %v1965_v21, %v1963_v54  ;;  %v1614_v54 = vld [vmem:[#allocation11 + $0x18] sm:$0xff]  ;;  %v1613_v21 = vld [vmem:[#allocation11 + $0x10] sm:$0xff] }
 0x644   :  { %1334 = vmatmul.mubr.f32.vlgmr.msra.gmra.mxu0 %v3024_v43  ;;  %1405 = vmatmul.mubr.f32.vlgmr.msra.gmra.mxu1 %v3024_v43 }
 0x645   :  { %1437 = vmatpush1.msra.mxu0 %v2826_v60  ;;  %1508 = vmatpush1.msra.mxu1 %v2829_v61  ;;  %v3353_v60 = vld [vmem:[#allocation23_spill] sm:$0xff]  ;;  %v3354_v61 = vld [vmem:[#allocation24_spill] sm:$0xff] }
 0x646   :  { %1438 = vmatprep.subr.mxu0 %v2832_v55  ;;  %1509 = vmatprep.subr.mxu1 %v2835_v0  ;;  %v3355_v55 = vld [vmem:[#allocation25_spill] sm:$0xff]  ;;  %v3356_v0 = vld [vmem:[#allocation26_spill] sm:$0xff] }
 0x647   :  { %1439 = vmatpush1.msra.mxu0 %v2838_v53  ;;  %1510 = vmatpush1.msra.mxu1 %v2841_v51  ;;  %v3357_v53 = vld [vmem:[#allocation27_spill] sm:$0xff]  ;;  %v3358_v51 = vld [vmem:[#allocation28_spill] sm:$0xff] }
 0x648   :  { %1440 = vmatprep.subr.mxu0 %v2844_v62  ;;  %1511 = vmatprep.subr.mxu1 %v2847_v58  ;;  %v3359_v62 = vld [vmem:[#allocation29_spill] sm:$0xff]  ;;  %v3360_v58 = vld [vmem:[#allocation30_spill] sm:$0xff] }
 0x649   :  { %1441 = vmatpush1.msra.mxu0 %v2850_v4  ;;  %1512 = vmatpush1.msra.mxu1 %v2853_v63  ;;  %v3361_v4 = vld [vmem:[#allocation31_spill] sm:$0xff]  ;;  %v3362_v63 = vld [vmem:[#allocation32_spill] sm:$0xff] }
 0x64a   :  { %1442 = vmatprep.subr.mxu0 %v2856_v59  ;;  %1513 = vmatprep.subr.mxu1 %v2859_v1  ;;  %v3363_v59 = vld [vmem:[#allocation33_spill] sm:$0xff]  ;;  %v3364_v1 = vld [vmem:[#allocation34_spill] sm:$0xff] }
 0x64b   :  { %1443 = vmatpush1.msra.mxu0 %v2862_v2  ;;  %1514 = vmatpush1.msra.mxu1 %v2865_v5  ;;  %v3365_v2 = vld [vmem:[#allocation35_spill] sm:$0xff]  ;;  %v3366_v5 = vld [vmem:[#allocation36_spill] sm:$0xff] }
 0x64c   :  { %1444 = vmatprep.subr.mxu0 %v2868_v6  ;;  %1515 = vmatprep.subr.mxu1 %v2871_v7  ;;  %v3367_v6 = vmov 0.0   ;;  %v3368_v7 = vld [vmem:[#allocation37_spill] sm:$0xff] }
 0x64d   :  { %1445 = vmatpush1.msra.mxu0 %v2874_v8  ;;  %1516 = vmatpush1.msra.mxu1 %v2877_v9  ;;  %v1626_v8 = vld [vmem:[#allocation11 + $0x78] sm:$0xff] }
 0x64e   :  { %1446 = vmatprep.subr.mxu0 %v2880_v10  ;;  %1517 = vmatprep.subr.mxu1 %v2883_v11 }
 0x64f   :  { %1447 = vmatpush1.msra.mxu0 %v2886_v12  ;;  %1518 = vmatpush1.msra.mxu1 %v2889_v13  ;;  %v3369_v13 = vld [vmem:[#allocation20_spill] sm:$0xff] }
 0x650   :  { %1448 = vmatprep.subr.mxu0 %v2892_v14  ;;  %1519 = vmatprep.subr.mxu1 %v2895_v15 }
 0x651   :  { %1449 = vmatpush1.msra.mxu0 %v2898_v16  ;;  %1520 = vmatpush1.msra.mxu1 %v2901_v17  ;;  %v3370_v17 = vld [vmem:[#allocation38_spill] sm:$0xff] }
 0x652   :  { %1450 = vmatprep.subr.mxu0 %v2904_v18  ;;  %1521 = vmatprep.subr.mxu1 %v2907_v19 }
 0x653   :  { %1451 = vmatpush1.msra.mxu0 %v2910_v20  ;;  %1522 = vmatpush1.msra.mxu1 %v2913_v22 }
 0x654   :  { %1452 = vmatprep.subr.mxu0 %v2916_v25  ;;  %1523 = vmatprep.subr.mxu1 %v2919_v26 }
 0x655   :  { %1453 = vmatpush1.msra.mxu0 %v2922_v27  ;;  %1524 = vmatpush1.msra.mxu1 %v2925_v28 }
 0x656   :  { %1454 = vmatprep.subr.mxu0 %v2928_v30  ;;  %1525 = vmatprep.subr.mxu1 %v2931_v31 }
 0x657   :  { %1455 = vmatpush1.msra.mxu0 %v2934_v32  ;;  %1526 = vmatpush1.msra.mxu1 %v2937_v34 }
 0x658   :  { %1456 = vmatprep.subr.mxu0 %v2940_v35  ;;  %1527 = vmatprep.subr.mxu1 %v2943_v36 }
 0x659   :  { %1457 = vmatpush1.msra.mxu0 %v2946_v37  ;;  %1528 = vmatpush1.msra.mxu1 %v2949_v38 }
 0x65a   :  { %1458 = vmatprep.subr.mxu0 %v2952_v39  ;;  %1529 = vmatprep.subr.mxu1 %v2955_v40 }
 0x65b   :  { %1459 = vmatpush1.msra.mxu0 %v2958_v41  ;;  %1530 = vmatpush1.msra.mxu1 %v3351_v29  ;;  %v1612_v29 = vld [vmem:[#allocation11 + $0x8] sm:$0xff] }
 0x65c   :  { %1460 = vmatprep.subr.mxu0 %v3352_v49  ;;  %1531 = vmatprep.subr.mxu1 %v3353_v60  ;;  %v1611_v49 = vld [vmem:[#allocation11] sm:$0xff]  ;;  %v3372_v60 = vld [vmem:[#allocation40_spill] sm:$0xff] }
 0x65d   :  { %1461 = vmatpush1.msra.mxu0 %v3354_v61  ;;  %1532 = vmatpush1.msra.mxu1 %v3355_v55  ;;  %v3373_v61 = vld [vmem:[#allocation19_spill] sm:$0xff]  ;;  %v3374_v55 = vld [vmem:[#allocation17_spill] sm:$0xff] }
 0x65e   :  { %1462 = vmatprep.subr.mxu0 %v3356_v0  ;;  %1533 = vmatprep.subr.mxu1 %v3357_v53  ;;  %v3375_v0 = vld [vmem:[#allocation18_spill] sm:$0xff] }
 0x65f   :  { %1463 = vmatpush1.msra.mxu0 %v3358_v51  ;;  %1534 = vmatpush1.msra.mxu1 %v3359_v62 }
 0x660   :  { %1464 = vmatprep.subr.mxu0 %v3360_v58  ;;  %1535 = vmatprep.subr.mxu1 %v3361_v4 }
 0x661   :  { %1465 = vmatpush1.msra.mxu0 %v3362_v63  ;;  %1536 = vmatpush1.msra.mxu1 %v3363_v59 }
 0x662   :  { %1466 = vmatprep.subr.mxu0 %v3364_v1  ;;  %1537 = vmatprep.subr.mxu1 %v3365_v2 }
 0x663   :  { %1467 = vmatpush1.msra.mxu0 %v3366_v5  ;;  %1500 = vmatprep.mubr.f32.mxu0 %v3367_v6 }
 0x664   :  { %1538 = vmatpush1.msra.mxu1 %v3368_v7  ;;  %1571 = vmatprep.mubr.f32.mxu1 %v3367_v6 }
 0x665   :  { %1815 = vmatprep.subr.mxu0 %v1626_v8 }
 0x704   :  { %v1335_v9 = vpop.f32.mrf.mxu0  ;;  %v1406_v16 = vpop.f32.mrf.mxu1 }
 0x705   :  { %v1336_v10 = vadd.f32 %v1335_v9, %v3286_v3  ;;  %v1407_v18 = vadd.f32 %v1406_v16, %v3370_v17  ;;  %v1790_v9 = vld [vmem:[%s3126_s6] ss:$0 sm:$0xff]  ;;  %s2200_s6 = smov [#allocation12]  }
 0x706   :  { %v1337_v11 = vpop.f32.mrf.mxu0  ;;  %v1408_v19 = vpop.f32.mrf.mxu1  ;;  %s1752_s28 = sshll.u32 %s2200_s6, 4  ;;  %s1753_s28 = int_to_ptr.vmem [resolvable:$true] %s1752_s28 }
 0x707   :  { %v1784_v12 = vmul.f32 -1.442695, %v1336_v10  ;;  %v1338_v14 = vadd.f32 %v1337_v11, %v3369_v13  ;;  %v1786_v20 = vmul.f32 -1.442695, %v1407_v18  ;;  %v1409_v25 = vadd.f32 %v1408_v19, %v2577_v56  ;;  %s2162_s29 = scalar_lea.vmem %s1753_s28, 1024  ;;  %p2167_p12 = scmp.lt.s32.totalorder %s1753_s28, %s1753_s28 }
 0x708   :  { %p2163_p11 = scmp.ne.s32.totalorder %s1753_s28, %s2162_s29  ;;  %p2168_p13 = scmp.lt.s32.totalorder %s2162_s29, %s2162_s29 }
 0x709   :  { %1966 = vpow2.f32 %v1784_v12  ;;  %v1785_v15 = vmul.f32 -1.442695, %v1338_v14 }
 0x70a   :  { %p2169_p0 = por %p2168_p13, %p2167_p12 }
 0x70b   :  { %1968 = vpow2.f32 %v1785_v15 }
 0x70c   :  { %1970 = vpow2.f32 %v1786_v20  ;;  %p2170_p1 = pnand %p2169_p0, %p2163_p11 }
 0x716   :  { %v1967_v22 = vpop.eup %1966 }
 0x717   :  { %v1420_v26 = vadd.f32 1.0, %v1967_v22 }
 0x718   :  { %v1969_v27 = vpop.eup %1968 }
 0x719   :  { %1972 = vrcp.f32 %v1420_v26  ;;  %v1421_v28 = vadd.f32 1.0, %v1969_v27  ;;  %v1971_v30 = vpop.eup %1970 }
 0x71a   :  { %1974 = vtanh.f32 %v1409_v25  ;;  %v1422_v35 = vadd.f32 1.0, %v1971_v30 }
 0x71b   :  { %1976 = vrcp.f32 %v1421_v28 }
 0x71c   :  { %1978 = vrcp.f32 %v1422_v35 }
 0x726   :  { %v1973_v31 = vpop.eup %1972 }
 0x727   :  { %v1975_v32 = vpop.eup %1974 }
 0x728   :  { %v1977_v34 = vpop.eup %1976  ;;  %v1431_v37 = vmul.f32 %v1975_v32, %v1973_v31 }
 0x729   :  { %v1430_v36 = vmul.f32 %v1977_v34, %v3021_v33  ;;  %v1979_v39 = vpop.eup %1978  ;;  %v1622_v33 = vld [vmem:[#allocation11 + $0x58] sm:$0xff] }
 0x72b   :  { %v3097_v38 = vadd.f32 %v1431_v37, %v1430_v36 }
 0x72d   :  { %1980 = vtanh.f32 %v3097_v38 }
 0x73a   :  { %v1981_v40 = vpop.eup %1980 }
 0x73b   :  { %v1434_v41 = vmul.f32 %v1981_v40, %v1979_v39 }
 0x73d   :  { %1501 = vmatmul.mubr.f32.vlgmr.msra.gmra.mxu0 %v1434_v41  ;;  %1572 = vmatmul.mubr.f32.vlgmr.msra.gmra.mxu1 %v1434_v41 }
 0x73e   :  { %1816 = vmatpush3.msra.mxu0 %v1626_v8  ;;  %1847 = vmatprep.mubr.f32.mxu0 %v3371_v44 }
 0x73f   :  { %1817 = vmatprep.subr.mxu0 %v1625_v42 }
 0x740   :  { %1818 = vmatpush3.msra.mxu0 %v1625_v42 }
 0x741   :  { %1819 = vmatprep.subr.mxu0 %v1624_v23 }
 0x742   :  { %1820 = vmatpush3.msra.mxu0 %v1624_v23 }
 0x743   :  { %1821 = vmatprep.subr.mxu0 %v1623_v24 }
 0x744   :  { %1822 = vmatpush3.msra.mxu0 %v1623_v24 }
 0x745   :  { %1823 = vmatprep.subr.mxu0 %v1622_v33 }
 0x746   :  { %1824 = vmatpush3.msra.mxu0 %v1622_v33 }
 0x747   :  { %1825 = vmatprep.subr.mxu0 %v1621_v52 }
 0x748   :  { %1826 = vmatpush3.msra.mxu0 %v1621_v52 }
 0x749   :  { %1827 = vmatprep.subr.mxu0 %v1620_v48 }
 0x74a   :  { %1828 = vmatpush3.msra.mxu0 %v1620_v48 }
 0x74b   :  { %1829 = vmatprep.subr.mxu0 %v1619_v50 }
 0x74c   :  { %1830 = vmatpush3.msra.mxu0 %v1619_v50 }
 0x74d   :  { %1831 = vmatprep.subr.mxu0 %v1618_v47 }
 0x74e   :  { %1832 = vmatpush3.msra.mxu0 %v1618_v47 }
 0x74f   :  { %1833 = vmatprep.subr.mxu0 %v1617_v46 }
 0x750   :  { %1834 = vmatpush3.msra.mxu0 %v1617_v46 }
 0x751   :  { %1835 = vmatprep.subr.mxu0 %v1616_v57 }
 0x752   :  { %1836 = vmatpush3.msra.mxu0 %v1616_v57 }
 0x753   :  { %1837 = vmatprep.subr.mxu0 %v1615_v45 }
 0x754   :  { %1838 = vmatpush3.msra.mxu0 %v1615_v45 }
 0x755   :  { %1839 = vmatprep.subr.mxu0 %v1614_v54 }
 0x756   :  { %1840 = vmatpush3.msra.mxu0 %v1614_v54 }
 0x757   :  { %1841 = vmatprep.subr.mxu0 %v1613_v21 }
 0x758   :  { %1842 = vmatpush3.msra.mxu0 %v1613_v21 }
 0x759   :  { %1843 = vmatprep.subr.mxu0 %v1612_v29 }
 0x75a   :  { %1844 = vmatpush3.msra.mxu0 %v1612_v29 }
 0x75b   :  { %1845 = vmatprep.subr.mxu0 %v1611_v49 }
 0x75c   :  { %1846 = vmatpush3.msra.mxu0 %v1611_v49 }
 0x75d   :  { %1848 = vmatmul.mubr.f32.vlgmr.msra.gmra.mxu0 %v3372_v60 }
 0x75e   :  { %1850 = vmatprep.mubr.f32.mxu0 %v3373_v61 }
 0x761   :  { %1851 = vmatmul.mubr.f32.gmra.mxu0 %v3374_v55 }
 0x762   :  { %1853 = vmatprep.mubr.f32.mxu0 %v3375_v0 }
 0x765   :  { %1854 = vmatmul.mubr.f32.gmra.mxu0 %v3024_v43 }
 0x766   :  { %1856 = vmatprep.mubr.f32.mxu0 %v1434_v41 }
 0x7fd   :  { %v1502_v53 = vpop.f32.mrf.mxu0  ;;  %v1573_v59 = vpop.f32.mrf.mxu1 }
 0x7fe   :  { %v1503_v51 = vadd.f32 %v1502_v53, %v3286_v3  ;;  %v1574_v1 = vadd.f32 %v1573_v59, %v3370_v17 }
 0x7ff   :  { %v1504_v62 = vpop.f32.mrf.mxu0  ;;  %v1575_v2 = vpop.f32.mrf.mxu1 }
 0x800   :  { %v1787_v58 = vmul.f32 -1.442695, %v1503_v51  ;;  %v1505_v4 = vadd.f32 %v1504_v62, %v3369_v13  ;;  %v1789_v5 = vmul.f32 -1.442695, %v1574_v1  ;;  %v1576_v7 = vadd.f32 %v1575_v2, %v2577_v56 }
 0x802   :  { %1982 = vpow2.f32 %v1787_v58  ;;  %v1788_v63 = vmul.f32 -1.442695, %v1505_v4 }
 0x804   :  { %1984 = vpow2.f32 %v1788_v63 }
 0x805   :  { %1986 = vpow2.f32 %v1789_v5 }
 0x80f   :  { %v1983_v6 = vpop.eup %1982 }
 0x810   :  { %v1587_v43 = vadd.f32 1.0, %v1983_v6 }
 0x811   :  { %v1985_v8 = vpop.eup %1984 }
 0x812   :  { %1988 = vrcp.f32 %v1587_v43  ;;  %v1588_v3 = vadd.f32 1.0, %v1985_v8  ;;  %v1987_v11 = vpop.eup %1986 }
 0x813   :  { %1990 = vtanh.f32 %v1576_v7  ;;  %v1589_v17 = vadd.f32 1.0, %v1987_v11 }
 0x814   :  { %1992 = vrcp.f32 %v1588_v3 }
 0x815   :  { %1994 = vrcp.f32 %v1589_v17 }
 0x81d   :  { %v1849_v10 = vpop.f32.mrf.mxu0 }
 0x81e   :  { %v1706_v12 = vadd.f32 %v1849_v10, %v1790_v9 }
 0x81f   :  { %v1989_v13 = vpop.eup %1988  ;;  %v1700_v14 = vpop.f32.mrf.mxu0 }
 0x820   :  { %v1991_v15 = vpop.eup %1990  ;;  %1740 = vst [vmem:[#allocation12 + $0x8] sm:$0xff] %v1706_v12  ;;  %v1701_v16 = vadd.f32 %v1790_v9, %v1700_v14 }
 0x821   :  { %v1993_v56 = vpop.eup %1992  ;;  %v1852_v18 = vpop.f32.mrf.mxu0  ;;  %v1598_v20 = vmul.f32 %v1991_v15, %v1989_v13 }
 0x822   :  { %v1597_v19 = vmul.f32 %v1993_v56, %v3097_v38  ;;  %1739 = vst [vmem:[#allocation12] sm:$0xff] %v1701_v16  ;;  %v1716_v22 = vadd.f32 %v1852_v18, %v1790_v9  ;;  %v1995_v34 = vpop.eup %1994 }
 0x823   :  { %v1710_v25 = vpop.f32.mrf.mxu0 }
 0x824   :  { %v1599_v26 = vadd.f32 %v1598_v20, %v1597_v19  ;;  %1742 = vst [vmem:[#allocation12 + $0x18] sm:$0xff] %v1716_v22  ;;  %v1711_v27 = vadd.f32 %v1790_v9, %v1710_v25 }
 0x825   :  { %v1855_v28 = vpop.f32.mrf.mxu0 }
 0x826   :  { %1996 = vtanh.f32 %v1599_v26  ;;  %1741 = vst [vmem:[#allocation12 + $0x10] sm:$0xff] %v1711_v27  ;;  %v1726_v30 = vadd.f32 %v1855_v28, %v1790_v9 }
 0x827   :  { %v1720_v31 = vpop.f32.mrf.mxu0 }
 0x828   :  { %1744 = vst [vmem:[#allocation12 + $0x28] sm:$0xff] %v1726_v30  ;;  %v1721_v32 = vadd.f32 %v1790_v9, %v1720_v31 }
 0x82a   :  { %1743 = vst [vmem:[#allocation12 + $0x20] sm:$0xff] %v1721_v32 }
 0x833   :  { %v1997_v35 = vpop.eup %1996 }
 0x834   :  { %v1601_v36 = vmul.f32 %v1997_v35, %v1995_v34 }
 0x836   :  { %1857 = vmatmul.mubr.f32.gmra.mxu0 %v1601_v36 }
 0x8f6   :  { %v1858_v37 = vpop.f32.mrf.mxu0 }
 0x8f7   :  { %v1736_v38 = vadd.f32 %v1858_v37, %v1790_v9 }
 0x8f8   :  { %v1730_v39 = vpop.f32.mrf.mxu0 }
 0x8f9   :  { %1746 = vst [vmem:[#allocation12 + $0x38] sm:$0xff] %v1736_v38  ;;  %v1731_v40 = vadd.f32 %v1790_v9, %v1730_v39 }
 0x8fb   :  { %1745 = vst [vmem:[#allocation12 + $0x30] sm:$0xff] %v1731_v40 }
 0x8fc   :  { %2173 = shalt.err (!%p2170_p1)
}
 0x8fd   :  { %1758 = dma.vmem_to_hbm [thread:$0]  %s1753_s28, 1024, %s3127_s7, [#allocation5], %s2195_s1, %s2195_s1, %s2196_s16  }
 0x8fe   :  { %2188 = dma.done.wait [#allocation5], 1024  }
 0x8ff   :  { %2189 = vsyncadd [#allocation5], 4294966272 }
 0x900   :  { %1762 = vsyncpa [#allocation4], 1 }
 0x901   :  { %1763 = vsyncpa [#allocation7], 1 }
 0x902   :  { %1764 = vsyncpa [#allocation10], 1 }
 0x903   :  { %1765 = vsyncpa [#allocation5], 1 }

</bundles_post_ra>
